<compile_context>
chip_gen: v6e
topology: v6e:2x2x1
jax: 0.10.0
libtpu: 0.0.40
codegen_flags: <defaults>
</compile_context>

<pallas_src>
import jax
import jax.numpy as jnp
import numpy as np
from jax.experimental import pallas as pl
from jax.experimental.pallas import tpu as pltpu

KD = KH = KW = 3
STRIDE = 2
PADDING = 1
OUTPUT_PADDING = 1
PAD_LO = KD - 1 - PADDING                       # = 1  (reference only)
PAD_HI = KD - 1 - PADDING + OUTPUT_PADDING      # = 2  (reference only)

# Per-axis polyphase scatter matrix S[p, d, k] = 1 iff kernel tap k contributes to output
# parity p through input offset d, for transposed conv with stride=2, pad=1, out_pad=1:
#   p=0 (even output): d=0 -> k=1
#   p=1 (odd  output): d=0 -> k=2 ; d=1 -> k=0
_S = np.zeros((2, 2, 3), np.float32)
_S[0, 0, 1] = 1.0
_S[1, 0, 2] = 1.0
_S[1, 1, 0] = 1.0


def _fused_kernel(p_ref, w_ref, cb_ref, eb1_ref, o_ref):
    """One (batch, row-chunk) tile per grid step.

    p_ref:   (1, ROWS, 8*Ci)  bf16  im2col patch rows, channel-packed (dd,dh,dw,ci)
    w_ref:   (8*Ci, 8*Co)     bf16  phase-packed weights, cols (pd,ph,pw,co)
    cb_ref:  (1, 8*Co)        f32   ConvTranspose3d bias, tiled over phases
    eb1_ref: (1, 8*Co)        f32   module's extra bias + 1, tiled over phases
    o_ref:   (1, ROWS, 8*Co)  f32   phase-packed output tile
    """
    acc = jnp.dot(p_ref[0], w_ref[...], preferred_element_type=jnp.float32)
    o = acc + cb_ref[...]
    # forward: ((o + b) + o) * o + o  ==  o * (2*o + b + 1)
    o_ref[0] = o * (2.0 * o + eb1_ref[...])


def _pick_rows(dhw):
    """Largest MXU-friendly row-chunk that still yields >= 2 grid chunks."""
    for r in (256, 128, 64, 32, 16, 8):
        if dhw % r == 0 and dhw // r >= 2:
            return r
    return dhw


def model_forward(x, weight, conv_bias, extra_bias):
    """x: (N, Ci, D, H, W); weight: (Ci, Co, 3,3,3) [PyTorch ConvTranspose3d layout];
    conv_bias: (Co,); extra_bias: (Co,1,1,1). Returns (N, Co, 2D, 2H, 2W) float32."""
    N, Ci, D, H, W = x.shape
    Co = weight.shape[1]
    Dout = (D - 1) * STRIDE - 2 * PADDING + KD + OUTPUT_PADDING   # == 2*D
    Hout = (H - 1) * STRIDE - 2 * PADDING + KH + OUTPUT_PADDING   # == 2*H
    Wout = (W - 1) * STRIDE - 2 * PADDING + KW + OUTPUT_PADDING   # == 2*W
    DHW = D * H * W

    # Channels-last bf16 input, one zero plane at the high end of each spatial dim
    # (polyphase boundary: input index i = m + d can reach D/H/W).
    x_cl = jnp.transpose(x, (0, 2, 3, 4, 1)).astype(jnp.bfloat16)
    x_pad = jnp.pad(x_cl, ((0, 0), (0, 1), (0, 1), (0, 1), (0, 0)))

    # Lane-dense im2col in the wrapper: 8 shifted slices concatenated along channels.
    slices = []
    for dd in range(2):
        for dh in range(2):
            for dw in range(2):
                slices.append(x_pad[:, dd:dd + D, dh:dh + H, dw:dw + W, :])
    patch = jnp.concatenate(slices, axis=-1).reshape(N, DHW, 8 * Ci)   # bf16

    # Phase-packed weights: rows (dd,dh,dw,ci), cols (pd,ph,pw,co); zeros where no tap exists.
    S = jnp.asarray(_S, dtype=weight.dtype)
    w_big = jnp.einsum('pak,qbl,rcm,ioklm->abcipqro', S, S, S, weight)
    w_big = w_big.reshape(8 * Ci, 8 * Co).astype(jnp.bfloat16)

    cb_t = jnp.tile(conv_bias.reshape(-1), 8).reshape(1, 8 * Co).astype(jnp.float32)
    eb1_t = jnp.tile(extra_bias.reshape(-1) + 1.0, 8).reshape(1, 8 * Co).astype(jnp.float32)

    rows = _pick_rows(DHW)
    chunks = DHW // rows

    y = pl.pallas_call(
        _fused_kernel,
        out_shape=jax.ShapeDtypeStruct((N, DHW, 8 * Co), jnp.float32),
        grid_spec=pltpu.PrefetchScalarGridSpec(
            num_scalar_prefetch=0,
            grid=(N, chunks),
            in_specs=[
                pl.BlockSpec((1, rows, 8 * Ci), lambda n, c: (n, c, 0)),
                pl.BlockSpec((8 * Ci, 8 * Co), lambda n, c: (0, 0)),
                pl.BlockSpec((1, 8 * Co), lambda n, c: (0, 0)),
                pl.BlockSpec((1, 8 * Co), lambda n, c: (0, 0)),
            ],
            out_specs=pl.BlockSpec((1, rows, 8 * Co), lambda n, c: (n, c, 0)),
        ),
        compiler_params=pltpu.CompilerParams(
            dimension_semantics=("parallel", "parallel")),
    )(patch, w_big, cb_t, eb1_t)

    # Phase de-interleave: (n, md, mh, mw, pd, ph, pw, co) -> (n, co, md, pd, mh, ph, mw, pw).
    # This is a plain XLA strided copy; keep the phase-packed layout if the consumer allows it.
    y = y.reshape(N, D, H, W, 2, 2, 2, Co)
    y = jnp.transpose(y, (0, 7, 1, 4, 2, 5, 3, 6))
    return y.reshape(N, Co, Dout, Hout, Wout)


def reference(x, weight, conv_bias, extra_bias):
    """Pure-JAX reference (XLA conv) for correctness checking."""
    w = jnp.transpose(weight[:, :, ::-1, ::-1, ::-1], (1, 0, 2, 3, 4))  # (Co, Ci, kd, kh, kw)
    o = jax.lax.conv_general_dilated(
        x, w, window_strides=(1, 1, 1),
        padding=[(PAD_LO, PAD_HI)] * 3,
        lhs_dilation=(STRIDE,) * 3,
        dimension_numbers=("NCDHW", "OIDHW", "NCDHW"))
    o = o + conv_bias.reshape(1, -1, 1, 1, 1)
    b = extra_bias.reshape(1, -1, 1, 1, 1)
    return (2.0 * o + b) * o + o


if __name__ == "__main__":
    key = jax.random.PRNGKey(0)
    k1, k2, k3, k4 = jax.random.split(key, 4)

    N, Ci, Co = 2, 32, 64
    D = H = W = 8
    x = jax.random.normal(k1, (N, Ci, D, H, W), jnp.float32)
    # Deterministic synthetic parameters (shapes from the PyTorch module's __init__).
    weight = jax.random.normal(k2, (Ci, Co, KD, KH, KW), jnp.float32) * 0.05
    conv_bias = jax.random.normal(k3, (Co,), jnp.float32) * 0.05
    extra_bias = jax.random.normal(k4, (Co, 1, 1, 1), jnp.float32)

    y = jax.jit(model_forward)(x, weight, conv_bias, extra_bias)
    y = jax.block_until_ready(y)

    y_ref = reference(x, weight, conv_bias, extra_bias)
    rel_err = jnp.max(jnp.abs(y - y_ref)) / (jnp.max(jnp.abs(y_ref)) + 1e-6)
    assert y.shape == (N, Co, 2 * D, 2 * H, 2 * W), y.shape
    # bf16 MXU operands (f32 accumulation) -> slightly looser gate than pure f32
    assert rel_err < 5e-3, f"mismatch vs reference, rel_err={rel_err}"
    print("KERNEL_OK")
</pallas_src>

<mosaic_0001>
module attributes {stable_mosaic.version = 11 : i64} {
  func.func @_fused_kernel(%arg0: i32, %arg1: i32, %arg2: memref<1x256x256xbf16, #tpu.memory_space<vmem>>, %arg3: memref<256x512xbf16, #tpu.memory_space<vmem>>, %arg4: memref<1x512xf32, #tpu.memory_space<vmem>>, %arg5: memref<1x512xf32, #tpu.memory_space<vmem>>, %arg6: memref<1x256x512xf32, #tpu.memory_space<vmem>>) attributes {dimension_semantics = [#tpu.dimension_semantics<parallel>, #tpu.dimension_semantics<parallel>], iteration_bounds = array<i64: 2, 2>, scalar_prefetch = 0 : i64, scratch_operands = 0 : i64, tpu.core_type = #tpu.core_type<tc>, window_params = [{transform_indices = @transform_0, window_bounds = array<i64: 1, 256, 256>}, {pipeline_mode = #tpu.pipeline_mode<synchronous>, transform_indices = @transform_1, window_bounds = array<i64: 256, 512>}, {pipeline_mode = #tpu.pipeline_mode<synchronous>, transform_indices = @transform_2, window_bounds = array<i64: 1, 512>}, {pipeline_mode = #tpu.pipeline_mode<synchronous>, transform_indices = @transform_3, window_bounds = array<i64: 1, 512>}, {transform_indices = @transform_4, window_bounds = array<i64: 1, 256, 512>}]} {
    %c0 = arith.constant 0 : index
    %c0_0 = arith.constant 0 : index
    %c0_1 = arith.constant 0 : index
    %0 = vector.load %arg2[%c0, %c0_0, %c0_1] : memref<1x256x256xbf16, #tpu.memory_space<vmem>>, vector<1x256x256xbf16>
    %1 = vector.shape_cast %0 : vector<1x256x256xbf16> to vector<256x256xbf16>
    %c0_2 = arith.constant 0 : index
    %c0_3 = arith.constant 0 : index
    %2 = vector.load %arg3[%c0_2, %c0_3] : memref<256x512xbf16, #tpu.memory_space<vmem>>, vector<256x512xbf16>
    %cst = arith.constant dense<0.000000e+00> : vector<256x512xf32>
    %3 = tpu.matmul %1, %2, %cst {dimension_numbers = #tpu.dot_dimension_numbers<[1], [0], [0], [1], [0, 0, 1, 1], [], []>} : vector<256x256xbf16>, vector<256x512xbf16>, vector<256x512xf32> -> vector<256x512xf32>
    %c0_4 = arith.constant 0 : index
    %c0_5 = arith.constant 0 : index
    %4 = vector.load %arg4[%c0_4, %c0_5] : memref<1x512xf32, #tpu.memory_space<vmem>>, vector<1x512xf32>
    %5 = vector.broadcast %4 : vector<1x512xf32> to vector<256x512xf32>
    %6 = arith.addf %3, %5 : vector<256x512xf32>
    %cst_6 = arith.constant 2.000000e+00 : f32
    %7 = vector.broadcast %cst_6 : f32 to vector<256x512xf32>
    %8 = arith.mulf %7, %6 : vector<256x512xf32>
    %c0_7 = arith.constant 0 : index
    %c0_8 = arith.constant 0 : index
    %9 = vector.load %arg5[%c0_7, %c0_8] : memref<1x512xf32, #tpu.memory_space<vmem>>, vector<1x512xf32>
    %10 = vector.broadcast %9 : vector<1x512xf32> to vector<256x512xf32>
    %11 = arith.addf %8, %10 : vector<256x512xf32>
    %12 = arith.mulf %6, %11 : vector<256x512xf32>
    %c0_9 = arith.constant 0 : index
    %c0_10 = arith.constant 0 : index
    %c0_11 = arith.constant 0 : index
    %13 = vector.load %arg6[%c0_9, %c0_10, %c0_11] : memref<1x256x512xf32, #tpu.memory_space<vmem>>, vector<1x256x512xf32>
    %14 = vector.shape_cast %13 : vector<1x256x512xf32> to vector<256x512xf32>
    %15 = vector.shape_cast %12 : vector<256x512xf32> to vector<1x256x512xf32>
    tpu.vector_store %arg6[%c0_9, %c0_10, %c0_11], %15 {strides = array<i32>} : memref<1x256x512xf32, #tpu.memory_space<vmem>>, vector<1x256x512xf32>,
    return
  }
  func.func @transform_0(%arg0: i32, %arg1: i32) -> (i32, i32, i32) {
    %c0_i32 = arith.constant 0 : i32
    %c0_i32_0 = arith.constant 0 : i32
    return %arg0, %arg1, %c0_i32 : i32, i32, i32
  }
  func.func @transform_1(%arg0: i32, %arg1: i32) -> (i32, i32) {
    %c0_i32 = arith.constant 0 : i32
    %c0_i32_0 = arith.constant 0 : i32
    %c0_i32_1 = arith.constant 0 : i32
    return %c0_i32, %c0_i32_0 : i32, i32
  }
  func.func @transform_2(%arg0: i32, %arg1: i32) -> (i32, i32) {
    %c0_i32 = arith.constant 0 : i32
    %c0_i32_0 = arith.constant 0 : i32
    %c0_i32_1 = arith.constant 0 : i32
    return %c0_i32, %c0_i32_0 : i32, i32
  }
  func.func @transform_3(%arg0: i32, %arg1: i32) -> (i32, i32) {
    %c0_i32 = arith.constant 0 : i32
    %c0_i32_0 = arith.constant 0 : i32
    %c0_i32_1 = arith.constant 0 : i32
    return %c0_i32, %c0_i32_0 : i32, i32
  }
  func.func @transform_4(%arg0: i32, %arg1: i32) -> (i32, i32, i32) {
    %c0_i32 = arith.constant 0 : i32
    %c0_i32_0 = arith.constant 0 : i32
    return %arg0, %arg1, %c0_i32 : i32, i32, i32
  }
}

</mosaic_0001>

<bundles_post_ra>
// kernel: tile.18
= control target key start
LH: loop header
LB: loop body
LE: loop exit
PB: predicated region body
PF: predicated region fallthrough
CT: control target
= control target key end

     0   :  { %s22_s0 = inlined_call_operand.vmem [shape: f32[64], index: 0, kind: input, shape index: {}]   ;;  %s23_s1 = inlined_call_operand.vmem [shape: f32[8,64], index: 1, kind: output, shape index: {}]  }
   0x1   :  { %v4_v0 = vld [vmem:[%s22_s0] ss:$0 sm:$0xff] }
   0x2   :  { %5 = vst [vmem:[%s23_s1] sm:$0xff] %v4_v0 }

// kernel: tile.13
= control target key start
LH: loop header
LB: loop body
LE: loop exit
PB: predicated region body
PF: predicated region fallthrough
CT: control target
= control target key end

     0   :  { %2 = vsyncpa [#allocation1], 0  ;;  %s42_s6 = smov [#allocation0]   ;;  %s59_s0 = inlined_call_operand.hbm [shape: f32[64], index: 0, kind: input, shape index: {}]   ;;  %s60_s1 = inlined_call_operand.vmem [shape: f32[8,64], index: 1, kind: output, shape index: {}]  }
   0x1   :  { %s9_s7 = sshll.u32 %s42_s6, 4  ;;  %s10_s7 = int_to_ptr.vmem [resolvable:$true] %s9_s7 }
   0x2   :  { %s28_s8 = scalar_lea.vmem %s10_s7, 16  ;;  %s32_s9 = scalar_lea.vmem %s10_s7, 32 }
   0x3   :  { %p29_p0 = scmp.ne.s32.totalorder %s10_s7, %s28_s8  ;;  %p33_p1 = scmp.lt.s32.totalorder %s10_s7, %s10_s7 }
   0x4   :  { %p34_p2 = scmp.lt.s32.totalorder %s32_s9, %s28_s8 }
   0x6   :  { %p35_p3 = por %p34_p2, %p33_p1 }
   0x8   :  { %p36_p4 = pnand %p35_p3, %p29_p0 }
   0xa   :  { %39 = shalt.err (!%p36_p4)
}
   0xb   :  { %12 = dma.hbm_to_vmem [thread:$0]  %s59_s0, 16, %s10_s7, [#allocation1]  }
   0xc   :  { %40 = dma.done.wait [#allocation1], 16  }
   0xd   :  { %41 = vsyncadd [#allocation1], 4294967280  ;;  %v16_v0 = vld [vmem:[#allocation0] ss:$0 sm:$0xff] }
   0xe   :  { %17 = vst [vmem:[%s60_s1] sm:$0xff] %v16_v0 }
   0xf   :  { %18 = vsyncpa [#allocation1], 1 }

// kernel: tile.19
= control target key start
LH: loop header
LB: loop body
LE: loop exit
PB: predicated region body
PF: predicated region fallthrough
CT: control target
= control target key end

     0   :  { %vm3_vm0 = vcmask 523264   ;;  %s46_s8 = smov 64   ;;  %vm9_vm1 = vcmask 1048064   ;;  %s75_s0 = inlined_call_operand.vmem [shape: f32[8,64], index: 0, kind: input, shape index: {}]   ;;  %s76_s1 = inlined_call_operand.vmem [shape: f32[1,512], index: 1, kind: output, shape index: {}]  }
   0x1   :  { %v41_v0 = vld [vmem:[%s75_s0 + $0x1] ss:$2 sm:$0xf]   ;;  %v2_v1 = vld [vmem:[%s75_s0] ss:$2 sm:$0xf]  }
   0x2   :  { %7 = vrot.lane.b32.xlu0 %v41_v0, %s46_s8  ;;  %4 = vst.msk [vmem:[#allocation0] ss:$8 sm:$0xf] %vm3_vm0, %v2_v1  }
  0x74   :  { %v8_v2 = vpop.permute.xlu0 %7  }
  0x75   :  { %10 = vst.msk [vmem:[#allocation0] ss:$8 sm:$0xf] %vm9_vm1, %v8_v2  }
  0x7c   :  { %v15_v3 = vld [vmem:[#allocation0] sm:$0x1]  ;;  %v20_v4 = vld [vmem:[#allocation0 + $0x8] sm:$0x1]  ;;  %v26_v5 = vld [vmem:[#allocation0 + $0x10] sm:$0x1] }
  0x7d   :  { %18 = vst [vmem:[%s76_s1] sm:$0x1] %v15_v3  ;;  %42 = vst [vmem:[%s76_s1 + $0x1] sm:$0x1] %v20_v4  ;;  %v33_v6 = vld [vmem:[#allocation0 + $0x18] sm:$0x1] }
  0x7e   :  { %43 = vst [vmem:[%s76_s1 + $0x2] sm:$0x1] %v26_v5  ;;  %44 = vst [vmem:[%s76_s1 + $0x3] sm:$0x1] %v33_v6 }

// kernel: model_forward.1
= control target key start
LH: loop header
LB: loop body
LE: loop exit
PB: predicated region body
PF: predicated region fallthrough
CT: control target
= control target key end

     0   :  { %s2219_s15 = smov 0   ;;  %s2221_s16 = smov 0   ;;  %s2919_s0 = inlined_call_operand.vmem [shape: bf16[2,512,256], index: 0, kind: input, shape index: {}]   ;;  %s2920_s1 = inlined_call_operand.vmem [shape: bf16[256,512], index: 1, kind: input, shape index: {}]   ;;  %s2921_s2 = inlined_call_operand.vmem [shape: f32[1,512], index: 2, kind: input, shape index: {}]   ;;  %s2922_s3 = inlined_call_operand.vmem [shape: f32[1,512], index: 3, kind: input, shape index: {}]   ;;  %s2923_s4 = inlined_call_operand.vmem [shape: f32[2,512,512], index: 4, kind: output, shape index: {}]  }
   0x1   :  { %s2223_s17 = smov 0   ;;  %s2225_s18 = smov 0  }
   0x2   :  { %s2227_s19 = smov 0  }
   0x3 LB: > { %s23_s20 = sadd.s32 1, %s2184_s17  ;;  %s26_s21 = sadd.s32 1, %s2188_s18  ;;  %s2192_s19 = sphi %s2227_s19, %s14_s19   ;;  %s2188_s18 = sphi %s2225_s18, %s2927_s18   ;;  %s2184_s17 = sphi %s2223_s17, %s2926_s17   ;;  %s2180_s16 = sphi %s2221_s16, %s2925_s16   ;;  %s2176_s15 = sphi %s2219_s15, %s2924_s15  }
   0x4   : > { %p24_p0 = scmp.ge.s32.totalorder %s23_s20, 2  ;;  %p1863_p1 = scmp.ge.s32.totalorder %s2192_s19, 1 }
   0x5   : > { %p184_p2 = scmp.lt.s32.totalorder %s2192_s19, 5 }
   0x6   : > { %s2929_s20 = smov (%p24_p0, %s23_s20), 0  ;;  %s2931_s21 = smov (!%p24_p0, %s26_s21), %s2188_s18 }
   0x7   : > { %p185_p3 = pnand %p1863_p1, %p184_p2  ;;  %p28_p4 = scmp.ge.s32.totalorder %s2931_s21, 2 }
   0x8   : > { %s1864_s24 = sshll.u32 (!%p185_p3), %s2176_s15, 5  ;;  %p221_p5 = scmp.lt.s32.totalorder (!%p185_p3), %s2180_s16, 1 }
   0x9   : > { %s2933_s21 = smov (%p28_p4, %s2931_s21), 0  ;;  %188 = sbr.rel (%p185_p3) target bundleno = 409 (0x199), region = 36 }
   0xa   : > { %p223_p6 = scmp.lt.s32.totalorder (!%p185_p3), %s1864_s24, 63 }
   0xe   : > { %v2010_v0 = vld [vmem:[%s2920_s1 + $0xe4] ss:$16 sps:$4 sm:$0xff]   ;;  %v2012_v1 = vld [vmem:[%s2920_s1 + $0xec] ss:$16 sps:$4 sm:$0xff]   ;;  %v2014_v2 = vld [vmem:[%s2920_s1 + $0xe0] ss:$16 sps:$4 sm:$0xff]  }
   0xf   : > { %840 = vmatprep.subr.bf16.mxu0 %v2010_v0  ;;  %v2015_v3 = vld [vmem:[%s2920_s1 + $0xe8] ss:$16 sps:$4 sm:$0xff]   ;;  %1033 = vmatprep.subr.bf16.mxu1 %v2012_v1  ;;  %v2016_v4 = vld [vmem:[%s2920_s1 + $0xc4] ss:$16 sps:$4 sm:$0xff]   ;;  %s2935_s24 = smov (!%p223_p6, %s1864_s24), 63  ;;  %s2937_s16 = smov (!%p221_p5, %s2180_s16), 1 }
  0x10   : > { %841 = vmatpush1.bf16.msra.mxu0 %v2014_v2  ;;  %1034 = vmatpush1.bf16.msra.mxu1 %v2015_v3  ;;  %v2018_v5 = vld [vmem:[%s2920_s1 + $0xcc] ss:$16 sps:$4 sm:$0xff]   ;;  %v2020_v6 = vld [vmem:[%s2920_s1 + $0xc0] ss:$16 sps:$4 sm:$0xff]   ;;  %v2021_v7 = vld [vmem:[%s2920_s1 + $0xc8] ss:$16 sps:$4 sm:$0xff]  }
  0x11   : > { %842 = vmatprep.subr.bf16.mxu0 %v2016_v4  ;;  %s1869_s13 = sshll.u32 %s2935_s24, 2  ;;  %1035 = vmatprep.subr.bf16.mxu1 %v2018_v5  ;;  %v2022_v8 = vld [vmem:[%s2920_s1 + $0xa4] ss:$16 sps:$4 sm:$0xff]   ;;  %s1870_s22 = sshll.u32 %s2937_s16, 8  ;;  %v2024_v9 = vld [vmem:[%s2920_s1 + $0xac] ss:$16 sps:$4 sm:$0xff]  }
  0x12   : > { %v2026_v10 = vld [vmem:[%s2920_s1 + $0xa0] ss:$16 sps:$4 sm:$0xff]   ;;  %v2027_v11 = vld [vmem:[%s2920_s1 + $0xa8] ss:$16 sps:$4 sm:$0xff]   ;;  %s2295_s30 = sadd.s32 %s1870_s22, %s1869_s13  ;;  %v2028_v12 = vld [vmem:[%s2920_s1 + $0x84] ss:$16 sps:$4 sm:$0xff]  }
  0x13   : > { %v2030_v13 = vld [vmem:[%s2920_s1 + $0x8c] ss:$16 sps:$4 sm:$0xff]   ;;  %v2032_v14 = vld [vmem:[%s2920_s1 + $0x80] ss:$16 sps:$4 sm:$0xff]   ;;  %v2033_v15 = vld [vmem:[%s2920_s1 + $0x88] ss:$16 sps:$4 sm:$0xff]  }
  0x14   : > { %843 = vmatpush1.bf16.msra.mxu0 %v2020_v6  ;;  %1036 = vmatpush1.bf16.msra.mxu1 %v2021_v7  ;;  %v2034_v16 = vld [vmem:[%s2920_s1 + $0x64] ss:$16 sps:$4 sm:$0xff]   ;;  %v2036_v17 = vld [vmem:[%s2920_s1 + $0x6c] ss:$16 sps:$4 sm:$0xff]   ;;  %v2038_v18 = vld [vmem:[%s2920_s1 + $0x60] ss:$16 sps:$4 sm:$0xff]  }
  0x15   : > { %844 = vmatprep.subr.bf16.mxu0 %v2022_v8  ;;  %1037 = vmatprep.subr.bf16.mxu1 %v2024_v9  ;;  %v2039_v19 = vld [vmem:[%s2920_s1 + $0x68] ss:$16 sps:$4 sm:$0xff]   ;;  %v2040_v20 = vld [vmem:[%s2920_s1 + $0x44] ss:$16 sps:$4 sm:$0xff]   ;;  %v2042_v21 = vld [vmem:[%s2920_s1 + $0x4c] ss:$16 sps:$4 sm:$0xff]  }
  0x16   : > { %v2044_v22 = vld [vmem:[%s2920_s1 + $0x40] ss:$16 sps:$4 sm:$0xff]   ;;  %v2045_v23 = vld [vmem:[%s2920_s1 + $0x48] ss:$16 sps:$4 sm:$0xff]   ;;  %v2046_v24 = vld [vmem:[%s2920_s1 + $0x24] ss:$16 sps:$4 sm:$0xff]  }
  0x17   : > { %v2048_v25 = vld [vmem:[%s2920_s1 + $0x2c] ss:$16 sps:$4 sm:$0xff]   ;;  %v2050_v26 = vld [vmem:[%s2920_s1 + $0x20] ss:$16 sps:$4 sm:$0xff]   ;;  %v2051_v27 = vld [vmem:[%s2920_s1 + $0x28] ss:$16 sps:$4 sm:$0xff]  }
  0x18   : > { %845 = vmatpush1.bf16.msra.mxu0 %v2026_v10  ;;  %1038 = vmatpush1.bf16.msra.mxu1 %v2027_v11  ;;  %v2052_v28 = vld [vmem:[%s2920_s1 + $0x4] ss:$16 sps:$4 sm:$0xff]   ;;  %v2054_v29 = vld [vmem:[%s2920_s1 + $0xc] ss:$16 sps:$4 sm:$0xff]   ;;  %v2056_v30 = vld [vmem:[%s2920_s1] ss:$16 sps:$4 sm:$0xff]  }
  0x19   : > { %846 = vmatprep.subr.bf16.mxu0 %v2028_v12  ;;  %1039 = vmatprep.subr.bf16.mxu1 %v2030_v13  ;;  %v2057_v31 = vld [vmem:[%s2920_s1 + $0x8] ss:$16 sps:$4 sm:$0xff]   ;;  %v2058_v32 = vld [vmem:[%s2920_s1 + $0x1e4] ss:$16 sps:$4 sm:$0xff]   ;;  %v2060_v33 = vld [vmem:[%s2920_s1 + $0x1ec] ss:$16 sps:$4 sm:$0xff]  }
  0x1a   : > { %v2062_v34 = vld [vmem:[%s2920_s1 + $0x1e0] ss:$16 sps:$4 sm:$0xff]   ;;  %v2063_v35 = vld [vmem:[%s2920_s1 + $0x1e8] ss:$16 sps:$4 sm:$0xff]   ;;  %s1865_s23 = sshll.u32 %s2935_s24, 1  ;;  %s1866_s25 = sshll.u32 %s2937_s16, 7 }
  0x1b   : > { %v2064_v36 = vld [vmem:[%s2920_s1 + $0x1c4] ss:$16 sps:$4 sm:$0xff]   ;;  %v2066_v37 = vld [vmem:[%s2920_s1 + $0x1cc] ss:$16 sps:$4 sm:$0xff]   ;;  %s227_s5 = sadd.s32 %s1866_s25, %s1865_s23  ;;  %v2068_v38 = vld [vmem:[%s2920_s1 + $0x1c0] ss:$16 sps:$4 sm:$0xff]  }
  0x1c   : > { %847 = vmatpush1.bf16.msra.mxu0 %v2032_v14  ;;  %1040 = vmatpush1.bf16.msra.mxu1 %v2033_v15  ;;  %v2069_v39 = vld [vmem:[%s2920_s1 + $0x1c8] ss:$16 sps:$4 sm:$0xff]   ;;  %v2070_v40 = vld [vmem:[%s2920_s1 + $0x1a4] ss:$16 sps:$4 sm:$0xff]   ;;  %v2072_v41 = vld [vmem:[%s2920_s1 + $0x1ac] ss:$16 sps:$4 sm:$0xff]  }
  0x1d   : > { %848 = vmatprep.subr.bf16.mxu0 %v2034_v16  ;;  %1041 = vmatprep.subr.bf16.mxu1 %v2036_v17  ;;  %s1867_s12 = sshll.u32 %s227_s5, 2  ;;  %v2074_v42 = vld [vmem:[%s2920_s1 + $0x1a0] ss:$16 sps:$4 sm:$0xff]   ;;  %v2075_v43 = vld [vmem:[%s2920_s1 + $0x1a8] ss:$16 sps:$4 sm:$0xff]  }
  0x1e   : > { %v2076_v44 = vld [vmem:[%s2920_s1 + $0x184] ss:$16 sps:$4 sm:$0xff]   ;;  %s2401_s28 = scalar_lea.vmem %s2919_s0, %s1867_s12  ;;  %v2078_v45 = vld [vmem:[%s2920_s1 + $0x18c] ss:$16 sps:$4 sm:$0xff]   ;;  %v2080_v46 = vld [vmem:[%s2920_s1 + $0x180] ss:$16 sps:$4 sm:$0xff]  }
  0x1f   : > { %v2081_v47 = vld [vmem:[%s2920_s1 + $0x188] ss:$16 sps:$4 sm:$0xff]   ;;  %v2108_v48 = vld [vmem:[%s2401_s28 + $0x4] ss:$8 sps:$4 sm:$0xff]   ;;  %v2086_v51 = vld [vmem:[%s2920_s1 + $0x160] ss:$16 sps:$4 sm:$0xff]  }
  0x20   : > { %849 = vmatpush1.bf16.msra.mxu0 %v2038_v18  ;;  %1042 = vmatpush1.bf16.msra.mxu1 %v2039_v19  ;;  %v2082_v49 = vld [vmem:[%s2920_s1 + $0x164] ss:$16 sps:$4 sm:$0xff]   ;;  %v2084_v50 = vld [vmem:[%s2920_s1 + $0x16c] ss:$16 sps:$4 sm:$0xff]   ;;  %v2087_v52 = vld [vmem:[%s2920_s1 + $0x168] ss:$16 sps:$4 sm:$0xff]  }
  0x21   : > { %850 = vmatprep.subr.bf16.mxu0 %v2040_v20  ;;  %1043 = vmatprep.subr.bf16.mxu1 %v2042_v21  ;;  %v2088_v53 = vld [vmem:[%s2920_s1 + $0x144] ss:$16 sps:$4 sm:$0xff]   ;;  %v2090_v54 = vld [vmem:[%s2920_s1 + $0x14c] ss:$16 sps:$4 sm:$0xff]   ;;  %v2092_v55 = vld [vmem:[%s2920_s1 + $0x140] ss:$16 sps:$4 sm:$0xff]  }
  0x22   : > { %872 = vmatprep.mubr.bf16.mxu0 %v2108_v48  ;;  %1065 = vmatprep.mubr.bf16.mxu1 %v2108_v48  ;;  %v2093_v56 = vld [vmem:[%s2920_s1 + $0x148] ss:$16 sps:$4 sm:$0xff]   ;;  %v2094_v57 = vld [vmem:[%s2920_s1 + $0x124] ss:$16 sps:$4 sm:$0xff]   ;;  %v2096_v58 = vld [vmem:[%s2920_s1 + $0x12c] ss:$16 sps:$4 sm:$0xff]  }
  0x23   : > { %v2098_v59 = vld [vmem:[%s2920_s1 + $0x120] ss:$16 sps:$4 sm:$0xff]   ;;  %v2099_v60 = vld [vmem:[%s2920_s1 + $0x128] ss:$16 sps:$4 sm:$0xff]   ;;  %v2100_v61 = vld [vmem:[%s2920_s1 + $0x104] ss:$16 sps:$4 sm:$0xff]  }
  0x24   : > { %851 = vmatpush1.bf16.msra.mxu0 %v2044_v22  ;;  %1044 = vmatpush1.bf16.msra.mxu1 %v2045_v23  ;;  %v2102_v62 = vld [vmem:[%s2920_s1 + $0x10c] ss:$16 sps:$4 sm:$0xff]   ;;  %v2104_v63 = vld [vmem:[%s2920_s1 + $0x100] ss:$16 sps:$4 sm:$0xff]   ;;  %v2105_v0 = vld [vmem:[%s2920_s1 + $0x108] ss:$16 sps:$4 sm:$0xff]  }
  0x25   : > { %852 = vmatprep.subr.bf16.mxu0 %v2046_v24  ;;  %1045 = vmatprep.subr.bf16.mxu1 %v2048_v25  ;;  %v2106_v1 = vld [vmem:[%s2401_s28] ss:$8 sps:$4 sm:$0xff]   ;;  %v2109_v2 = vld [vmem:[%s2401_s28 + $0x14] ss:$8 sps:$4 sm:$0xff]   ;;  %v2111_v3 = vld [vmem:[%s2401_s28 + $0x10] ss:$8 sps:$4 sm:$0xff]  }
  0x26   : > { %v2112_v4 = vld [vmem:[%s2401_s28 + $0x24] ss:$8 sps:$4 sm:$0xff]   ;;  %v2114_v5 = vld [vmem:[%s2401_s28 + $0x20] ss:$8 sps:$4 sm:$0xff]   ;;  %v2115_v6 = vld [vmem:[%s2401_s28 + $0x34] ss:$8 sps:$4 sm:$0xff]  }
  0x27   : > { %v2117_v7 = vld [vmem:[%s2401_s28 + $0x30] ss:$8 sps:$4 sm:$0xff]   ;;  %v2118_v8 = vld [vmem:[%s2401_s28 + $0x44] ss:$8 sps:$4 sm:$0xff]   ;;  %v2120_v9 = vld [vmem:[%s2401_s28 + $0x40] ss:$8 sps:$4 sm:$0xff]  }
  0x28   : > { %853 = vmatpush1.bf16.msra.mxu0 %v2050_v26  ;;  %1046 = vmatpush1.bf16.msra.mxu1 %v2051_v27  ;;  %v2121_v10 = vld [vmem:[%s2401_s28 + $0x54] ss:$8 sps:$4 sm:$0xff]   ;;  %v2123_v11 = vld [vmem:[%s2401_s28 + $0x50] ss:$8 sps:$4 sm:$0xff]   ;;  %v2124_v12 = vld [vmem:[%s2401_s28 + $0x64] ss:$8 sps:$4 sm:$0xff]  }
  0x29   : > { %854 = vmatprep.subr.bf16.mxu0 %v2052_v28  ;;  %1047 = vmatprep.subr.bf16.mxu1 %v2054_v29  ;;  %v2126_v13 = vld [vmem:[%s2401_s28 + $0x60] ss:$8 sps:$4 sm:$0xff]   ;;  %v2127_v14 = vld [vmem:[%s2401_s28 + $0x74] ss:$8 sps:$4 sm:$0xff]   ;;  %v2129_v15 = vld [vmem:[%s2401_s28 + $0x70] ss:$8 sps:$4 sm:$0xff]  }
  0x2a   : > { %v2130_v16 = vld [vmem:[%s2401_s28 + $0x84] ss:$8 sps:$4 sm:$0xff]   ;;  %v2132_v17 = vld [vmem:[%s2401_s28 + $0x80] ss:$8 sps:$4 sm:$0xff]   ;;  %v2133_v18 = vld [vmem:[%s2401_s28 + $0x94] ss:$8 sps:$4 sm:$0xff]  }
  0x2b   : > { %v2135_v19 = vld [vmem:[%s2401_s28 + $0x90] ss:$8 sps:$4 sm:$0xff]   ;;  %v2136_v20 = vld [vmem:[%s2401_s28 + $0xa4] ss:$8 sps:$4 sm:$0xff]   ;;  %v2138_v21 = vld [vmem:[%s2401_s28 + $0xa0] ss:$8 sps:$4 sm:$0xff]  }
  0x2c   : > { %855 = vmatpush1.bf16.msra.mxu0 %v2056_v30  ;;  %1048 = vmatpush1.bf16.msra.mxu1 %v2057_v31  ;;  %v2139_v22 = vld [vmem:[%s2401_s28 + $0xb4] ss:$8 sps:$4 sm:$0xff]   ;;  %v2141_v23 = vld [vmem:[%s2401_s28 + $0xb0] ss:$8 sps:$4 sm:$0xff]   ;;  %v2142_v24 = vld [vmem:[%s2401_s28 + $0xc4] ss:$8 sps:$4 sm:$0xff]  }
  0x2d   : > { %856 = vmatprep.subr.bf16.mxu0 %v2058_v32  ;;  %1049 = vmatprep.subr.bf16.mxu1 %v2060_v33  ;;  %v2144_v25 = vld [vmem:[%s2401_s28 + $0xc0] ss:$8 sps:$4 sm:$0xff]   ;;  %v2145_v26 = vld [vmem:[%s2401_s28 + $0xd4] ss:$8 sps:$4 sm:$0xff]   ;;  %v2147_v27 = vld [vmem:[%s2401_s28 + $0xd0] ss:$8 sps:$4 sm:$0xff]   ;;  %v340_v32 = vlaneseq }
  0x2e   : > { %v2148_v28 = vld [vmem:[%s2401_s28 + $0xe4] ss:$8 sps:$4 sm:$0xff]   ;;  %v2150_v29 = vld [vmem:[%s2401_s28 + $0xe0] ss:$8 sps:$4 sm:$0xff]   ;;  %v2151_v30 = vld [vmem:[%s2401_s28 + $0xf4] ss:$8 sps:$4 sm:$0xff]  }
  0x2f   : > { %v2153_v31 = vld [vmem:[%s2401_s28 + $0xf0] ss:$8 sps:$4 sm:$0xff]   ;;  %v341_v33 = vshrl.u32 %v340_v32, 7  ;;  %s1871_s28 = sshll.u32 %s2295_s30, 3 }
  0x30   : > { %857 = vmatpush2.bf16.msra.mxu0 %v2062_v34  ;;  %1050 = vmatpush2.bf16.msra.mxu1 %v2063_v35  ;;  %s2524_s8 = scalar_lea.vmem %s2923_s4, %s1871_s28 }
  0x31   : > { %858 = vmatprep.subr.bf16.mxu0 %v2064_v36  ;;  %1051 = vmatprep.subr.bf16.mxu1 %v2066_v37  ;;  %v342_v34 = vsub.s32 0, %v341_v33  ;;  %v350_v35 = vsub.s32 2, %v341_v33  ;;  %v338_v36 = vld [vmem:[%s2921_s2] sm:$0xf]  ;;  %v346_v37 = vsub.s32 1, %v341_v33 }
  0x34   : > { %859 = vmatpush2.bf16.msra.mxu0 %v2068_v38  ;;  %1052 = vmatpush2.bf16.msra.mxu1 %v2069_v39  ;;  %v354_v38 = vsub.s32 3, %v341_v33  ;;  %v2495_v39 = vrot.slane %v338_v36, %v342_v34 }
  0x35   : > { %860 = vmatprep.subr.bf16.mxu0 %v2070_v40  ;;  %1053 = vmatprep.subr.bf16.mxu1 %v2072_v41  ;;  %v2497_v40 = vrot.slane %v338_v36, %v350_v35  ;;  %v1354_v41 = vld [vmem:[%s2922_s3] sm:$0xf] }
  0x38   : > { %861 = vmatpush2.bf16.msra.mxu0 %v2074_v42  ;;  %1054 = vmatpush2.bf16.msra.mxu1 %v2075_v43  ;;  %v2502_v42 = vrot.slane %v338_v36, %v346_v37  ;;  %v2504_v43 = vrot.slane %v338_v36, %v354_v38 }
  0x39   : > { %862 = vmatprep.subr.bf16.mxu0 %v2076_v44  ;;  %1055 = vmatprep.subr.bf16.mxu1 %v2078_v45 }
  0x3c   : > { %863 = vmatpush2.bf16.msra.mxu0 %v2080_v46  ;;  %1056 = vmatpush2.bf16.msra.mxu1 %v2081_v47  ;;  %v2507_v47 = vrot.slane %v1354_v41, %v342_v34 }
  0x3d   : > { %864 = vmatprep.subr.bf16.mxu0 %v2082_v49  ;;  %1057 = vmatprep.subr.bf16.mxu1 %v2084_v50  ;;  %v2510_v49 = vrot.slane %v1354_v41, %v350_v35 }
  0x40   : > { %865 = vmatpush2.bf16.msra.mxu0 %v2086_v51  ;;  %1058 = vmatpush2.bf16.msra.mxu1 %v2087_v52  ;;  %v2512_v51 = vrot.slane %v1354_v41, %v346_v37 }
  0x41   : > { %866 = vmatprep.subr.bf16.mxu0 %v2088_v53  ;;  %1059 = vmatprep.subr.bf16.mxu1 %v2090_v54  ;;  %v2514_v53 = vrot.slane %v1354_v41, %v354_v38 }
  0x44   : > { %867 = vmatpush2.bf16.msra.mxu0 %v2092_v55  ;;  %1060 = vmatpush2.bf16.msra.mxu1 %v2093_v56 }
  0x45   : > { %868 = vmatprep.subr.bf16.mxu0 %v2094_v57  ;;  %1061 = vmatprep.subr.bf16.mxu1 %v2096_v58 }
  0x48   : > { %869 = vmatpush2.bf16.msra.mxu0 %v2098_v59  ;;  %1062 = vmatpush2.bf16.msra.mxu1 %v2099_v60 }
  0x49   : > { %870 = vmatprep.subr.bf16.mxu0 %v2100_v61  ;;  %1063 = vmatprep.subr.bf16.mxu1 %v2102_v62 }
  0x4c   : > { %871 = vmatpush2.bf16.msra.mxu0 %v2104_v63  ;;  %1064 = vmatpush2.bf16.msra.mxu1 %v2105_v0 }
  0x4f   : > { %873 = vmatmul.mubr.bf16.vlgmr.msra.gmra.mxu0 %v2106_v1  ;;  %1066 = vmatmul.mubr.bf16.vlgmr.msra.gmra.mxu1 %v2106_v1 }
  0x50   : > { %882 = vmatprep.mubr.bf16.mxu0 %v2109_v2  ;;  %1075 = vmatprep.mubr.bf16.mxu1 %v2109_v2 }
  0x57   : > { %883 = vmatmul.mubr.bf16.gmra.mxu0 %v2111_v3  ;;  %1076 = vmatmul.mubr.bf16.gmra.mxu1 %v2111_v3 }
  0x58   : > { %892 = vmatprep.mubr.bf16.mxu0 %v2112_v4  ;;  %1085 = vmatprep.mubr.bf16.mxu1 %v2112_v4 }
  0x5f   : > { %893 = vmatmul.mubr.bf16.gmra.mxu0 %v2114_v5  ;;  %1086 = vmatmul.mubr.bf16.gmra.mxu1 %v2114_v5 }
  0x60   : > { %902 = vmatprep.mubr.bf16.mxu0 %v2115_v6  ;;  %1095 = vmatprep.mubr.bf16.mxu1 %v2115_v6 }
  0x67   : > { %903 = vmatmul.mubr.bf16.gmra.mxu0 %v2117_v7  ;;  %1096 = vmatmul.mubr.bf16.gmra.mxu1 %v2117_v7 }
  0x68   : > { %912 = vmatprep.mubr.bf16.mxu0 %v2118_v8  ;;  %1105 = vmatprep.mubr.bf16.mxu1 %v2118_v8 }
  0x6f   : > { %913 = vmatmul.mubr.bf16.gmra.mxu0 %v2120_v9  ;;  %1106 = vmatmul.mubr.bf16.gmra.mxu1 %v2120_v9 }
  0x70   : > { %922 = vmatprep.mubr.bf16.mxu0 %v2121_v10  ;;  %1115 = vmatprep.mubr.bf16.mxu1 %v2121_v10 }
  0x77   : > { %923 = vmatmul.mubr.bf16.gmra.mxu0 %v2123_v11  ;;  %1116 = vmatmul.mubr.bf16.gmra.mxu1 %v2123_v11 }
  0x78   : > { %932 = vmatprep.mubr.bf16.mxu0 %v2124_v12  ;;  %1125 = vmatprep.mubr.bf16.mxu1 %v2124_v12 }
  0x7f   : > { %933 = vmatmul.mubr.bf16.gmra.mxu0 %v2126_v13  ;;  %1126 = vmatmul.mubr.bf16.gmra.mxu1 %v2126_v13 }
  0x80   : > { %942 = vmatprep.mubr.bf16.mxu0 %v2127_v14  ;;  %1135 = vmatprep.mubr.bf16.mxu1 %v2127_v14 }
  0x87   : > { %943 = vmatmul.mubr.bf16.gmra.mxu0 %v2129_v15  ;;  %1136 = vmatmul.mubr.bf16.gmra.mxu1 %v2129_v15 }
  0x88   : > { %952 = vmatprep.mubr.bf16.mxu0 %v2130_v16  ;;  %1145 = vmatprep.mubr.bf16.mxu1 %v2130_v16 }
  0x8f   : > { %953 = vmatmul.mubr.bf16.gmra.mxu0 %v2132_v17  ;;  %1146 = vmatmul.mubr.bf16.gmra.mxu1 %v2132_v17 }
  0x90   : > { %962 = vmatprep.mubr.bf16.mxu0 %v2133_v18  ;;  %1155 = vmatprep.mubr.bf16.mxu1 %v2133_v18 }
  0x97   : > { %963 = vmatmul.mubr.bf16.gmra.mxu0 %v2135_v19  ;;  %1156 = vmatmul.mubr.bf16.gmra.mxu1 %v2135_v19 }
  0x98   : > { %972 = vmatprep.mubr.bf16.mxu0 %v2136_v20  ;;  %1165 = vmatprep.mubr.bf16.mxu1 %v2136_v20 }
  0x9f   : > { %973 = vmatmul.mubr.bf16.gmra.mxu0 %v2138_v21  ;;  %1166 = vmatmul.mubr.bf16.gmra.mxu1 %v2138_v21 }
  0xa0   : > { %982 = vmatprep.mubr.bf16.mxu0 %v2139_v22  ;;  %1175 = vmatprep.mubr.bf16.mxu1 %v2139_v22 }
  0xa7   : > { %983 = vmatmul.mubr.bf16.gmra.mxu0 %v2141_v23  ;;  %1176 = vmatmul.mubr.bf16.gmra.mxu1 %v2141_v23 }
  0xa8   : > { %992 = vmatprep.mubr.bf16.mxu0 %v2142_v24  ;;  %1185 = vmatprep.mubr.bf16.mxu1 %v2142_v24 }
  0xaf   : > { %993 = vmatmul.mubr.bf16.gmra.mxu0 %v2144_v25  ;;  %1186 = vmatmul.mubr.bf16.gmra.mxu1 %v2144_v25 }
  0xb0   : > { %1002 = vmatprep.mubr.bf16.mxu0 %v2145_v26  ;;  %1195 = vmatprep.mubr.bf16.mxu1 %v2145_v26 }
  0xb7   : > { %1003 = vmatmul.mubr.bf16.gmra.mxu0 %v2147_v27  ;;  %1196 = vmatmul.mubr.bf16.gmra.mxu1 %v2147_v27 }
  0xb8   : > { %1012 = vmatprep.mubr.bf16.mxu0 %v2148_v28  ;;  %1205 = vmatprep.mubr.bf16.mxu1 %v2148_v28 }
  0xbf   : > { %1013 = vmatmul.mubr.bf16.gmra.mxu0 %v2150_v29  ;;  %1206 = vmatmul.mubr.bf16.gmra.mxu1 %v2150_v29 }
  0xc0   : > { %1022 = vmatprep.mubr.bf16.mxu0 %v2151_v30  ;;  %1215 = vmatprep.mubr.bf16.mxu1 %v2151_v30 }
  0xc7   : > { %1023 = vmatmul.mubr.bf16.gmra.mxu0 %v2153_v31  ;;  %1216 = vmatmul.mubr.bf16.gmra.mxu1 %v2153_v31 }
 0x10f   : > { %v874_v44 = vpop.f32.mrf.mxu0  ;;  %v1067_v45 = vpop.f32.mrf.mxu1 }
 0x110   : > { %v875_v46 = vadd.f32 %v874_v44, %v2495_v39  ;;  %v1068_v48 = vadd.f32 %v1067_v45, %v2497_v40 }
 0x111   : > { %v876_v50 = vpop.f32.mrf.mxu0  ;;  %v1069_v52 = vpop.f32.mrf.mxu1 }
 0x112   : > { %v1226_v54 = vmul.f32 2.0, %v875_v46  ;;  %v1228_v55 = vmul.f32 2.0, %v1068_v48  ;;  %v877_v56 = vadd.f32 %v876_v50, %v2502_v42  ;;  %v1070_v57 = vadd.f32 %v1069_v52, %v2504_v43 }
 0x113   : > { %v878_v58 = vpop.f32.mrf.mxu0  ;;  %v1071_v59 = vpop.f32.mrf.mxu1 }
 0x114   : > { %v1376_v60 = vadd.f32 %v2507_v47, %v1226_v54  ;;  %v1378_v61 = vadd.f32 %v2510_v49, %v1228_v55  ;;  %v1227_v62 = vmul.f32 2.0, %v877_v56  ;;  %v1229_v63 = vmul.f32 2.0, %v1070_v57 }
 0x115   : > { %v879_v0 = vadd.f32 %v878_v58, %v2495_v39  ;;  %v1072_v1 = vadd.f32 %v1071_v59, %v2497_v40  ;;  %v880_v2 = vpop.f32.mrf.mxu0  ;;  %v1073_v3 = vpop.f32.mrf.mxu1 }
 0x116   : > { %v1504_v4 = vmul.f32 %v1376_v60, %v875_v46  ;;  %v1506_v5 = vmul.f32 %v1378_v61, %v1068_v48  ;;  %v1377_v6 = vadd.f32 %v2512_v51, %v1227_v62  ;;  %v1379_v7 = vadd.f32 %v2514_v53, %v1229_v63 }
 0x117   : > { %v1230_v8 = vmul.f32 2.0, %v879_v0  ;;  %v1232_v9 = vmul.f32 2.0, %v1072_v1  ;;  %v881_v10 = vadd.f32 %v880_v2, %v2502_v42  ;;  %v1074_v11 = vadd.f32 %v1073_v3, %v2504_v43  ;;  %v884_v12 = vpop.f32.mrf.mxu0  ;;  %v1077_v13 = vpop.f32.mrf.mxu1 }
 0x118   : > { %1632 = vst [vmem:[%s2524_s8] sm:$0xff] %v1504_v4  ;;  %1634 = vst [vmem:[%s2524_s8 + $0x10] sm:$0xff] %v1506_v5  ;;  %v1505_v14 = vmul.f32 %v1377_v6, %v877_v56  ;;  %v1507_v15 = vmul.f32 %v1379_v7, %v1070_v57  ;;  %v885_v16 = vadd.f32 %v884_v12, %v2495_v39 }
 0x119   : > { %v1078_v17 = vadd.f32 %v1077_v13, %v2497_v40  ;;  %v1380_v18 = vadd.f32 %v2507_v47, %v1230_v8  ;;  %v1382_v19 = vadd.f32 %v2510_v49, %v1232_v9  ;;  %v1231_v20 = vmul.f32 2.0, %v881_v10  ;;  %v886_v22 = vpop.f32.mrf.mxu0  ;;  %v1079_v23 = vpop.f32.mrf.mxu1 }
 0x11a   : > { %v1233_v21 = vmul.f32 2.0, %v1074_v11  ;;  %1633 = vst [vmem:[%s2524_s8 + $0x8] sm:$0xff] %v1505_v14  ;;  %1635 = vst [vmem:[%s2524_s8 + $0x18] sm:$0xff] %v1507_v15  ;;  %v1234_v24 = vmul.f32 2.0, %v885_v16  ;;  %v887_v26 = vadd.f32 %v886_v22, %v2502_v42  ;;  %v1080_v27 = vadd.f32 %v1079_v23, %v2504_v43 }
 0x11b   : > { %v1236_v25 = vmul.f32 2.0, %v1078_v17  ;;  %v1508_v28 = vmul.f32 %v1380_v18, %v879_v0  ;;  %v1510_v29 = vmul.f32 %v1382_v19, %v1072_v1  ;;  %v1381_v30 = vadd.f32 %v2512_v51, %v1231_v20  ;;  %v888_v32 = vpop.f32.mrf.mxu0  ;;  %v1081_v33 = vpop.f32.mrf.mxu1 }
 0x11c   : > { %v1383_v31 = vadd.f32 %v2514_v53, %v1233_v21  ;;  %v1384_v34 = vadd.f32 %v2507_v47, %v1234_v24  ;;  %v1235_v36 = vmul.f32 2.0, %v887_v26  ;;  %v1237_v37 = vmul.f32 2.0, %v1080_v27 }
 0x11d   : > { %v1386_v35 = vadd.f32 %v2510_v49, %v1236_v25  ;;  %1636 = vst [vmem:[%s2524_s8 + $0x20] sm:$0xff] %v1508_v28  ;;  %1638 = vst [vmem:[%s2524_s8 + $0x30] sm:$0xff] %v1510_v29  ;;  %v1509_v38 = vmul.f32 %v1381_v30, %v881_v10  ;;  %v889_v44 = vadd.f32 %v888_v32, %v2495_v39  ;;  %v890_v46 = vpop.f32.mrf.mxu0  ;;  %v1083_v48 = vpop.f32.mrf.mxu1 }
 0x11e   : > { %v1511_v41 = vmul.f32 %v1383_v31, %v1074_v11  ;;  %v1082_v45 = vadd.f32 %v1081_v33, %v2497_v40  ;;  %v1512_v50 = vmul.f32 %v1384_v34, %v885_v16  ;;  %v1385_v54 = vadd.f32 %v2512_v51, %v1235_v36 }
 0x11f   : > { %v1514_v52 = vmul.f32 %v1386_v35, %v1078_v17  ;;  %v1387_v55 = vadd.f32 %v2514_v53, %v1237_v37  ;;  %1637 = vst [vmem:[%s2524_s8 + $0x28] sm:$0xff] %v1509_v38  ;;  %v1238_v56 = vmul.f32 2.0, %v889_v44  ;;  %v891_v58 = vadd.f32 %v890_v46, %v2502_v42  ;;  %v894_v60 = vpop.f32.mrf.mxu0  ;;  %v1087_v61 = vpop.f32.mrf.mxu1 }
 0x120   : > { %1639 = vst [vmem:[%s2524_s8 + $0x38] sm:$0xff] %v1511_v41  ;;  %v1240_v57 = vmul.f32 2.0, %v1082_v45  ;;  %v1084_v59 = vadd.f32 %v1083_v48, %v2504_v43  ;;  %1640 = vst [vmem:[%s2524_s8 + $0x40] sm:$0xff] %v1512_v50  ;;  %v1513_v62 = vmul.f32 %v1385_v54, %v887_v26  ;;  %v895_v0 = vadd.f32 %v894_v60, %v2495_v39 }
 0x121   : > { %1642 = vst [vmem:[%s2524_s8 + $0x50] sm:$0xff] %v1514_v52  ;;  %v1515_v63 = vmul.f32 %v1387_v55, %v1080_v27  ;;  %v1088_v1 = vadd.f32 %v1087_v61, %v2497_v40  ;;  %v1388_v2 = vadd.f32 %v2507_v47, %v1238_v56  ;;  %v1239_v4 = vmul.f32 2.0, %v891_v58  ;;  %v896_v6 = vpop.f32.mrf.mxu0  ;;  %v1089_v7 = vpop.f32.mrf.mxu1 }
 0x122   : > { %v1390_v3 = vadd.f32 %v2510_v49, %v1240_v57  ;;  %v1241_v5 = vmul.f32 2.0, %v1084_v59  ;;  %1641 = vst [vmem:[%s2524_s8 + $0x48] sm:$0xff] %v1513_v62  ;;  %v1242_v8 = vmul.f32 2.0, %v895_v0  ;;  %v897_v10 = vadd.f32 %v896_v6, %v2502_v42 }
 0x123   : > { %1643 = vst [vmem:[%s2524_s8 + $0x58] sm:$0xff] %v1515_v63  ;;  %v1244_v9 = vmul.f32 2.0, %v1088_v1  ;;  %v1090_v11 = vadd.f32 %v1089_v7, %v2504_v43  ;;  %v1516_v12 = vmul.f32 %v1388_v2, %v889_v44  ;;  %v1389_v14 = vadd.f32 %v2512_v51, %v1239_v4  ;;  %v898_v16 = vpop.f32.mrf.mxu0  ;;  %v1091_v17 = vpop.f32.mrf.mxu1 }
 0x124   : > { %v1518_v13 = vmul.f32 %v1390_v3, %v1082_v45  ;;  %v1391_v15 = vadd.f32 %v2514_v53, %v1241_v5  ;;  %v1392_v18 = vadd.f32 %v2507_v47, %v1242_v8  ;;  %v1243_v20 = vmul.f32 2.0, %v897_v10 }
 0x125   : > { %v1394_v19 = vadd.f32 %v2510_v49, %v1244_v9  ;;  %v1245_v21 = vmul.f32 2.0, %v1090_v11  ;;  %1644 = vst [vmem:[%s2524_s8 + $0x60] sm:$0xff] %v1516_v12  ;;  %v1517_v22 = vmul.f32 %v1389_v14, %v891_v58  ;;  %v899_v24 = vadd.f32 %v898_v16, %v2495_v39  ;;  %v900_v26 = vpop.f32.mrf.mxu0  ;;  %v1093_v27 = vpop.f32.mrf.mxu1 }
 0x126   : > { %1646 = vst [vmem:[%s2524_s8 + $0x70] sm:$0xff] %v1518_v13  ;;  %v1519_v23 = vmul.f32 %v1391_v15, %v1084_v59  ;;  %v1092_v25 = vadd.f32 %v1091_v17, %v2497_v40  ;;  %v1520_v28 = vmul.f32 %v1392_v18, %v895_v0  ;;  %v1393_v30 = vadd.f32 %v2512_v51, %v1243_v20 }
 0x127   : > { %v1522_v29 = vmul.f32 %v1394_v19, %v1088_v1  ;;  %v1395_v31 = vadd.f32 %v2514_v53, %v1245_v21  ;;  %1645 = vst [vmem:[%s2524_s8 + $0x68] sm:$0xff] %v1517_v22  ;;  %v1246_v32 = vmul.f32 2.0, %v899_v24  ;;  %v901_v34 = vadd.f32 %v900_v26, %v2502_v42  ;;  %v904_v36 = vpop.f32.mrf.mxu0  ;;  %v1097_v37 = vpop.f32.mrf.mxu1 }
 0x128   : > { %1647 = vst [vmem:[%s2524_s8 + $0x78] sm:$0xff] %v1519_v23  ;;  %v1248_v33 = vmul.f32 2.0, %v1092_v25  ;;  %v1094_v35 = vadd.f32 %v1093_v27, %v2504_v43  ;;  %1648 = vst [vmem:[%s2524_s8 + $0x80] sm:$0xff] %v1520_v28  ;;  %v1521_v38 = vmul.f32 %v1393_v30, %v897_v10  ;;  %v905_v44 = vadd.f32 %v904_v36, %v2495_v39 }
 0x129   : > { %1650 = vst [vmem:[%s2524_s8 + $0x90] sm:$0xff] %v1522_v29  ;;  %v1523_v41 = vmul.f32 %v1395_v31, %v1090_v11  ;;  %v1098_v45 = vadd.f32 %v1097_v37, %v2497_v40  ;;  %v1396_v46 = vadd.f32 %v2507_v47, %v1246_v32  ;;  %v1247_v50 = vmul.f32 2.0, %v901_v34  ;;  %v906_v54 = vpop.f32.mrf.mxu0  ;;  %v1099_v55 = vpop.f32.mrf.mxu1 }
 0x12a   : > { %v1398_v48 = vadd.f32 %v2510_v49, %v1248_v33  ;;  %v1249_v52 = vmul.f32 2.0, %v1094_v35  ;;  %1649 = vst [vmem:[%s2524_s8 + $0x88] sm:$0xff] %v1521_v38  ;;  %v1250_v56 = vmul.f32 2.0, %v905_v44  ;;  %v907_v58 = vadd.f32 %v906_v54, %v2502_v42 }
 0x12b   : > { %1651 = vst [vmem:[%s2524_s8 + $0x98] sm:$0xff] %v1523_v41  ;;  %v1252_v57 = vmul.f32 2.0, %v1098_v45  ;;  %v1100_v59 = vadd.f32 %v1099_v55, %v2504_v43  ;;  %v1524_v60 = vmul.f32 %v1396_v46, %v899_v24  ;;  %v1397_v62 = vadd.f32 %v2512_v51, %v1247_v50  ;;  %v908_v0 = vpop.f32.mrf.mxu0  ;;  %v1101_v1 = vpop.f32.mrf.mxu1 }
 0x12c   : > { %v1526_v61 = vmul.f32 %v1398_v48, %v1092_v25  ;;  %v1399_v63 = vadd.f32 %v2514_v53, %v1249_v52  ;;  %v1400_v2 = vadd.f32 %v2507_v47, %v1250_v56  ;;  %v1251_v4 = vmul.f32 2.0, %v907_v58 }
 0x12d   : > { %v1402_v3 = vadd.f32 %v2510_v49, %v1252_v57  ;;  %v1253_v5 = vmul.f32 2.0, %v1100_v59  ;;  %1652 = vst [vmem:[%s2524_s8 + $0xa0] sm:$0xff] %v1524_v60  ;;  %v1525_v6 = vmul.f32 %v1397_v62, %v901_v34  ;;  %v909_v8 = vadd.f32 %v908_v0, %v2495_v39  ;;  %v910_v10 = vpop.f32.mrf.mxu0  ;;  %v1103_v11 = vpop.f32.mrf.mxu1 }
 0x12e   : > { %1654 = vst [vmem:[%s2524_s8 + $0xb0] sm:$0xff] %v1526_v61  ;;  %v1527_v7 = vmul.f32 %v1399_v63, %v1094_v35  ;;  %v1102_v9 = vadd.f32 %v1101_v1, %v2497_v40  ;;  %v1528_v12 = vmul.f32 %v1400_v2, %v905_v44  ;;  %v1401_v14 = vadd.f32 %v2512_v51, %v1251_v4 }
 0x12f   : > { %v1530_v13 = vmul.f32 %v1402_v3, %v1098_v45  ;;  %v1403_v15 = vadd.f32 %v2514_v53, %v1253_v5  ;;  %1653 = vst [vmem:[%s2524_s8 + $0xa8] sm:$0xff] %v1525_v6  ;;  %v1254_v16 = vmul.f32 2.0, %v909_v8  ;;  %v911_v18 = vadd.f32 %v910_v10, %v2502_v42  ;;  %v914_v20 = vpop.f32.mrf.mxu0  ;;  %v1107_v21 = vpop.f32.mrf.mxu1 }
 0x130   : > { %1655 = vst [vmem:[%s2524_s8 + $0xb8] sm:$0xff] %v1527_v7  ;;  %v1256_v17 = vmul.f32 2.0, %v1102_v9  ;;  %v1104_v19 = vadd.f32 %v1103_v11, %v2504_v43  ;;  %1656 = vst [vmem:[%s2524_s8 + $0xc0] sm:$0xff] %v1528_v12  ;;  %v1529_v22 = vmul.f32 %v1401_v14, %v907_v58  ;;  %v915_v24 = vadd.f32 %v914_v20, %v2495_v39 }
 0x131   : > { %1658 = vst [vmem:[%s2524_s8 + $0xd0] sm:$0xff] %v1530_v13  ;;  %v1531_v23 = vmul.f32 %v1403_v15, %v1100_v59  ;;  %v1108_v25 = vadd.f32 %v1107_v21, %v2497_v40  ;;  %v1404_v26 = vadd.f32 %v2507_v47, %v1254_v16  ;;  %v1255_v28 = vmul.f32 2.0, %v911_v18  ;;  %v916_v30 = vpop.f32.mrf.mxu0  ;;  %v1109_v31 = vpop.f32.mrf.mxu1 }
 0x132   : > { %v1406_v27 = vadd.f32 %v2510_v49, %v1256_v17  ;;  %v1257_v29 = vmul.f32 2.0, %v1104_v19  ;;  %1657 = vst [vmem:[%s2524_s8 + $0xc8] sm:$0xff] %v1529_v22  ;;  %v1258_v32 = vmul.f32 2.0, %v915_v24  ;;  %v917_v34 = vadd.f32 %v916_v30, %v2502_v42 }
 0x133   : > { %1659 = vst [vmem:[%s2524_s8 + $0xd8] sm:$0xff] %v1531_v23  ;;  %v1260_v33 = vmul.f32 2.0, %v1108_v25  ;;  %v1110_v35 = vadd.f32 %v1109_v31, %v2504_v43  ;;  %v1532_v36 = vmul.f32 %v1404_v26, %v909_v8  ;;  %v1405_v38 = vadd.f32 %v2512_v51, %v1255_v28  ;;  %v918_v44 = vpop.f32.mrf.mxu0  ;;  %v1111_v45 = vpop.f32.mrf.mxu1 }
 0x134   : > { %v1534_v37 = vmul.f32 %v1406_v27, %v1102_v9  ;;  %v1407_v41 = vadd.f32 %v2514_v53, %v1257_v29  ;;  %v1408_v46 = vadd.f32 %v2507_v47, %v1258_v32  ;;  %v1259_v50 = vmul.f32 2.0, %v917_v34 }
 0x135   : > { %v1410_v48 = vadd.f32 %v2510_v49, %v1260_v33  ;;  %v1261_v52 = vmul.f32 2.0, %v1110_v35  ;;  %1660 = vst [vmem:[%s2524_s8 + $0xe0] sm:$0xff] %v1532_v36  ;;  %v1533_v54 = vmul.f32 %v1405_v38, %v911_v18  ;;  %v919_v56 = vadd.f32 %v918_v44, %v2495_v39  ;;  %v920_v58 = vpop.f32.mrf.mxu0  ;;  %v1113_v59 = vpop.f32.mrf.mxu1 }
 0x136   : > { %1662 = vst [vmem:[%s2524_s8 + $0xf0] sm:$0xff] %v1534_v37  ;;  %v1535_v55 = vmul.f32 %v1407_v41, %v1104_v19  ;;  %v1112_v57 = vadd.f32 %v1111_v45, %v2497_v40  ;;  %v1536_v60 = vmul.f32 %v1408_v46, %v915_v24  ;;  %v1409_v62 = vadd.f32 %v2512_v51, %v1259_v50 }
 0x137   : > { %v1538_v61 = vmul.f32 %v1410_v48, %v1108_v25  ;;  %v1411_v63 = vadd.f32 %v2514_v53, %v1261_v52  ;;  %1661 = vst [vmem:[%s2524_s8 + $0xe8] sm:$0xff] %v1533_v54  ;;  %v1262_v0 = vmul.f32 2.0, %v919_v56  ;;  %v921_v2 = vadd.f32 %v920_v58, %v2502_v42  ;;  %v924_v4 = vpop.f32.mrf.mxu0  ;;  %v1117_v5 = vpop.f32.mrf.mxu1 }
 0x138   : > { %1663 = vst [vmem:[%s2524_s8 + $0xf8] sm:$0xff] %v1535_v55  ;;  %v1264_v1 = vmul.f32 2.0, %v1112_v57  ;;  %v1114_v3 = vadd.f32 %v1113_v59, %v2504_v43  ;;  %1664 = vst [vmem:[%s2524_s8 + $0x100] sm:$0xff] %v1536_v60  ;;  %v1537_v6 = vmul.f32 %v1409_v62, %v917_v34  ;;  %v925_v8 = vadd.f32 %v924_v4, %v2495_v39 }
 0x139   : > { %1666 = vst [vmem:[%s2524_s8 + $0x110] sm:$0xff] %v1538_v61  ;;  %v1539_v7 = vmul.f32 %v1411_v63, %v1110_v35  ;;  %v1118_v9 = vadd.f32 %v1117_v5, %v2497_v40  ;;  %v1412_v10 = vadd.f32 %v2507_v47, %v1262_v0  ;;  %v1263_v12 = vmul.f32 2.0, %v921_v2  ;;  %v926_v14 = vpop.f32.mrf.mxu0  ;;  %v1119_v15 = vpop.f32.mrf.mxu1 }
 0x13a   : > { %v1414_v11 = vadd.f32 %v2510_v49, %v1264_v1  ;;  %v1265_v13 = vmul.f32 2.0, %v1114_v3  ;;  %1665 = vst [vmem:[%s2524_s8 + $0x108] sm:$0xff] %v1537_v6  ;;  %v1266_v16 = vmul.f32 2.0, %v925_v8  ;;  %v927_v18 = vadd.f32 %v926_v14, %v2502_v42 }
 0x13b   : > { %1667 = vst [vmem:[%s2524_s8 + $0x118] sm:$0xff] %v1539_v7  ;;  %v1268_v17 = vmul.f32 2.0, %v1118_v9  ;;  %v1120_v19 = vadd.f32 %v1119_v15, %v2504_v43  ;;  %v1540_v20 = vmul.f32 %v1412_v10, %v919_v56  ;;  %v1413_v22 = vadd.f32 %v2512_v51, %v1263_v12  ;;  %v928_v24 = vpop.f32.mrf.mxu0  ;;  %v1121_v25 = vpop.f32.mrf.mxu1 }
 0x13c   : > { %v1542_v21 = vmul.f32 %v1414_v11, %v1112_v57  ;;  %v1415_v23 = vadd.f32 %v2514_v53, %v1265_v13  ;;  %v1416_v26 = vadd.f32 %v2507_v47, %v1266_v16  ;;  %v1267_v28 = vmul.f32 2.0, %v927_v18 }
 0x13d   : > { %v1418_v27 = vadd.f32 %v2510_v49, %v1268_v17  ;;  %v1269_v29 = vmul.f32 2.0, %v1120_v19  ;;  %1668 = vst [vmem:[%s2524_s8 + $0x120] sm:$0xff] %v1540_v20  ;;  %v1541_v30 = vmul.f32 %v1413_v22, %v921_v2  ;;  %v929_v32 = vadd.f32 %v928_v24, %v2495_v39  ;;  %v930_v34 = vpop.f32.mrf.mxu0  ;;  %v1123_v35 = vpop.f32.mrf.mxu1 }
 0x13e   : > { %1670 = vst [vmem:[%s2524_s8 + $0x130] sm:$0xff] %v1542_v21  ;;  %v1543_v31 = vmul.f32 %v1415_v23, %v1114_v3  ;;  %v1122_v33 = vadd.f32 %v1121_v25, %v2497_v40  ;;  %v1544_v36 = vmul.f32 %v1416_v26, %v925_v8  ;;  %v1417_v38 = vadd.f32 %v2512_v51, %v1267_v28 }
 0x13f   : > { %v1546_v37 = vmul.f32 %v1418_v27, %v1118_v9  ;;  %v1419_v41 = vadd.f32 %v2514_v53, %v1269_v29  ;;  %1669 = vst [vmem:[%s2524_s8 + $0x128] sm:$0xff] %v1541_v30  ;;  %v1270_v44 = vmul.f32 2.0, %v929_v32  ;;  %v931_v46 = vadd.f32 %v930_v34, %v2502_v42  ;;  %v934_v50 = vpop.f32.mrf.mxu0  ;;  %v1127_v52 = vpop.f32.mrf.mxu1 }
 0x140   : > { %1671 = vst [vmem:[%s2524_s8 + $0x138] sm:$0xff] %v1543_v31  ;;  %v1272_v45 = vmul.f32 2.0, %v1122_v33  ;;  %v1124_v48 = vadd.f32 %v1123_v35, %v2504_v43  ;;  %1672 = vst [vmem:[%s2524_s8 + $0x140] sm:$0xff] %v1544_v36  ;;  %v1545_v54 = vmul.f32 %v1417_v38, %v927_v18  ;;  %v935_v56 = vadd.f32 %v934_v50, %v2495_v39 }
 0x141   : > { %1674 = vst [vmem:[%s2524_s8 + $0x150] sm:$0xff] %v1546_v37  ;;  %v1547_v55 = vmul.f32 %v1419_v41, %v1120_v19  ;;  %v1128_v57 = vadd.f32 %v1127_v52, %v2497_v40  ;;  %v1420_v58 = vadd.f32 %v2507_v47, %v1270_v44  ;;  %v1271_v60 = vmul.f32 2.0, %v931_v46  ;;  %v936_v62 = vpop.f32.mrf.mxu0  ;;  %v1129_v63 = vpop.f32.mrf.mxu1 }
 0x142   : > { %v1422_v59 = vadd.f32 %v2510_v49, %v1272_v45  ;;  %v1273_v61 = vmul.f32 2.0, %v1124_v48  ;;  %1673 = vst [vmem:[%s2524_s8 + $0x148] sm:$0xff] %v1545_v54  ;;  %v1274_v0 = vmul.f32 2.0, %v935_v56  ;;  %v937_v2 = vadd.f32 %v936_v62, %v2502_v42 }
 0x143   : > { %1675 = vst [vmem:[%s2524_s8 + $0x158] sm:$0xff] %v1547_v55  ;;  %v1276_v1 = vmul.f32 2.0, %v1128_v57  ;;  %v1130_v3 = vadd.f32 %v1129_v63, %v2504_v43  ;;  %v1548_v4 = vmul.f32 %v1420_v58, %v929_v32  ;;  %v1421_v6 = vadd.f32 %v2512_v51, %v1271_v60  ;;  %v938_v8 = vpop.f32.mrf.mxu0  ;;  %v1131_v9 = vpop.f32.mrf.mxu1 }
 0x144   : > { %v1550_v5 = vmul.f32 %v1422_v59, %v1122_v33  ;;  %v1423_v7 = vadd.f32 %v2514_v53, %v1273_v61  ;;  %v1424_v10 = vadd.f32 %v2507_v47, %v1274_v0  ;;  %v1275_v12 = vmul.f32 2.0, %v937_v2 }
 0x145   : > { %v1426_v11 = vadd.f32 %v2510_v49, %v1276_v1  ;;  %v1277_v13 = vmul.f32 2.0, %v1130_v3  ;;  %1676 = vst [vmem:[%s2524_s8 + $0x160] sm:$0xff] %v1548_v4  ;;  %v1549_v14 = vmul.f32 %v1421_v6, %v931_v46  ;;  %v939_v16 = vadd.f32 %v938_v8, %v2495_v39  ;;  %v940_v18 = vpop.f32.mrf.mxu0  ;;  %v1133_v19 = vpop.f32.mrf.mxu1 }
 0x146   : > { %1678 = vst [vmem:[%s2524_s8 + $0x170] sm:$0xff] %v1550_v5  ;;  %v1551_v15 = vmul.f32 %v1423_v7, %v1124_v48  ;;  %v1132_v17 = vadd.f32 %v1131_v9, %v2497_v40  ;;  %v1552_v20 = vmul.f32 %v1424_v10, %v935_v56  ;;  %v1425_v22 = vadd.f32 %v2512_v51, %v1275_v12 }
 0x147   : > { %v1554_v21 = vmul.f32 %v1426_v11, %v1128_v57  ;;  %v1427_v23 = vadd.f32 %v2514_v53, %v1277_v13  ;;  %1677 = vst [vmem:[%s2524_s8 + $0x168] sm:$0xff] %v1549_v14  ;;  %v1278_v24 = vmul.f32 2.0, %v939_v16  ;;  %v941_v26 = vadd.f32 %v940_v18, %v2502_v42  ;;  %v944_v28 = vpop.f32.mrf.mxu0  ;;  %v1137_v29 = vpop.f32.mrf.mxu1 }
 0x148   : > { %1679 = vst [vmem:[%s2524_s8 + $0x178] sm:$0xff] %v1551_v15  ;;  %v1280_v25 = vmul.f32 2.0, %v1132_v17  ;;  %v1134_v27 = vadd.f32 %v1133_v19, %v2504_v43  ;;  %1680 = vst [vmem:[%s2524_s8 + $0x180] sm:$0xff] %v1552_v20  ;;  %v1553_v30 = vmul.f32 %v1425_v22, %v937_v2  ;;  %v945_v32 = vadd.f32 %v944_v28, %v2495_v39 }
 0x149   : > { %1682 = vst [vmem:[%s2524_s8 + $0x190] sm:$0xff] %v1554_v21  ;;  %v1555_v31 = vmul.f32 %v1427_v23, %v1130_v3  ;;  %v1138_v33 = vadd.f32 %v1137_v29, %v2497_v40  ;;  %v1428_v34 = vadd.f32 %v2507_v47, %v1278_v24  ;;  %v1279_v36 = vmul.f32 2.0, %v941_v26  ;;  %v946_v38 = vpop.f32.mrf.mxu0  ;;  %v1139_v41 = vpop.f32.mrf.mxu1 }
 0x14a   : > { %v1430_v35 = vadd.f32 %v2510_v49, %v1280_v25  ;;  %v1281_v37 = vmul.f32 2.0, %v1134_v27  ;;  %1681 = vst [vmem:[%s2524_s8 + $0x188] sm:$0xff] %v1553_v30  ;;  %v1282_v44 = vmul.f32 2.0, %v945_v32  ;;  %v947_v46 = vadd.f32 %v946_v38, %v2502_v42 }
 0x14b   : > { %1683 = vst [vmem:[%s2524_s8 + $0x198] sm:$0xff] %v1555_v31  ;;  %v1284_v45 = vmul.f32 2.0, %v1138_v33  ;;  %v1140_v48 = vadd.f32 %v1139_v41, %v2504_v43  ;;  %v1556_v50 = vmul.f32 %v1428_v34, %v939_v16  ;;  %v1429_v54 = vadd.f32 %v2512_v51, %v1279_v36  ;;  %v948_v56 = vpop.f32.mrf.mxu0  ;;  %v1141_v57 = vpop.f32.mrf.mxu1 }
 0x14c   : > { %v1558_v52 = vmul.f32 %v1430_v35, %v1132_v17  ;;  %v1431_v55 = vadd.f32 %v2514_v53, %v1281_v37  ;;  %v1432_v58 = vadd.f32 %v2507_v47, %v1282_v44  ;;  %v1283_v60 = vmul.f32 2.0, %v947_v46 }
 0x14d   : > { %v1434_v59 = vadd.f32 %v2510_v49, %v1284_v45  ;;  %v1285_v61 = vmul.f32 2.0, %v1140_v48  ;;  %1684 = vst [vmem:[%s2524_s8 + $0x1a0] sm:$0xff] %v1556_v50  ;;  %v1557_v62 = vmul.f32 %v1429_v54, %v941_v26  ;;  %v949_v0 = vadd.f32 %v948_v56, %v2495_v39  ;;  %v950_v2 = vpop.f32.mrf.mxu0  ;;  %v1143_v3 = vpop.f32.mrf.mxu1 }
 0x14e   : > { %1686 = vst [vmem:[%s2524_s8 + $0x1b0] sm:$0xff] %v1558_v52  ;;  %v1559_v63 = vmul.f32 %v1431_v55, %v1134_v27  ;;  %v1142_v1 = vadd.f32 %v1141_v57, %v2497_v40  ;;  %v1560_v4 = vmul.f32 %v1432_v58, %v945_v32  ;;  %v1433_v6 = vadd.f32 %v2512_v51, %v1283_v60 }
 0x14f   : > { %v1562_v5 = vmul.f32 %v1434_v59, %v1138_v33  ;;  %v1435_v7 = vadd.f32 %v2514_v53, %v1285_v61  ;;  %1685 = vst [vmem:[%s2524_s8 + $0x1a8] sm:$0xff] %v1557_v62  ;;  %v1286_v8 = vmul.f32 2.0, %v949_v0  ;;  %v951_v10 = vadd.f32 %v950_v2, %v2502_v42  ;;  %v954_v12 = vpop.f32.mrf.mxu0  ;;  %v1147_v13 = vpop.f32.mrf.mxu1 }
 0x150   : > { %1687 = vst [vmem:[%s2524_s8 + $0x1b8] sm:$0xff] %v1559_v63  ;;  %v1288_v9 = vmul.f32 2.0, %v1142_v1  ;;  %v1144_v11 = vadd.f32 %v1143_v3, %v2504_v43  ;;  %1688 = vst [vmem:[%s2524_s8 + $0x1c0] sm:$0xff] %v1560_v4  ;;  %v1561_v14 = vmul.f32 %v1433_v6, %v947_v46  ;;  %v955_v16 = vadd.f32 %v954_v12, %v2495_v39 }
 0x151   : > { %1690 = vst [vmem:[%s2524_s8 + $0x1d0] sm:$0xff] %v1562_v5  ;;  %v1563_v15 = vmul.f32 %v1435_v7, %v1140_v48  ;;  %v1148_v17 = vadd.f32 %v1147_v13, %v2497_v40  ;;  %v1436_v18 = vadd.f32 %v2507_v47, %v1286_v8  ;;  %v1287_v20 = vmul.f32 2.0, %v951_v10  ;;  %v956_v22 = vpop.f32.mrf.mxu0  ;;  %v1149_v23 = vpop.f32.mrf.mxu1 }
 0x152   : > { %v1438_v19 = vadd.f32 %v2510_v49, %v1288_v9  ;;  %v1289_v21 = vmul.f32 2.0, %v1144_v11  ;;  %1689 = vst [vmem:[%s2524_s8 + $0x1c8] sm:$0xff] %v1561_v14  ;;  %v1290_v24 = vmul.f32 2.0, %v955_v16  ;;  %v957_v26 = vadd.f32 %v956_v22, %v2502_v42 }
 0x153   : > { %1691 = vst [vmem:[%s2524_s8 + $0x1d8] sm:$0xff] %v1563_v15  ;;  %v1292_v25 = vmul.f32 2.0, %v1148_v17  ;;  %v1150_v27 = vadd.f32 %v1149_v23, %v2504_v43  ;;  %v1564_v28 = vmul.f32 %v1436_v18, %v949_v0  ;;  %v1437_v30 = vadd.f32 %v2512_v51, %v1287_v20  ;;  %v958_v32 = vpop.f32.mrf.mxu0  ;;  %v1151_v33 = vpop.f32.mrf.mxu1 }
 0x154   : > { %v1566_v29 = vmul.f32 %v1438_v19, %v1142_v1  ;;  %v1439_v31 = vadd.f32 %v2514_v53, %v1289_v21  ;;  %v1440_v34 = vadd.f32 %v2507_v47, %v1290_v24  ;;  %v1291_v36 = vmul.f32 2.0, %v957_v26 }
 0x155   : > { %v1442_v35 = vadd.f32 %v2510_v49, %v1292_v25  ;;  %v1293_v37 = vmul.f32 2.0, %v1150_v27  ;;  %1692 = vst [vmem:[%s2524_s8 + $0x1e0] sm:$0xff] %v1564_v28  ;;  %v1565_v38 = vmul.f32 %v1437_v30, %v951_v10  ;;  %v959_v44 = vadd.f32 %v958_v32, %v2495_v39  ;;  %v960_v46 = vpop.f32.mrf.mxu0  ;;  %v1153_v48 = vpop.f32.mrf.mxu1 }
 0x156   : > { %1694 = vst [vmem:[%s2524_s8 + $0x1f0] sm:$0xff] %v1566_v29  ;;  %v1567_v41 = vmul.f32 %v1439_v31, %v1144_v11  ;;  %v1152_v45 = vadd.f32 %v1151_v33, %v2497_v40  ;;  %v1568_v50 = vmul.f32 %v1440_v34, %v955_v16  ;;  %v1441_v54 = vadd.f32 %v2512_v51, %v1291_v36 }
 0x157   : > { %v1570_v52 = vmul.f32 %v1442_v35, %v1148_v17  ;;  %v1443_v55 = vadd.f32 %v2514_v53, %v1293_v37  ;;  %1693 = vst [vmem:[%s2524_s8 + $0x1e8] sm:$0xff] %v1565_v38  ;;  %v1294_v56 = vmul.f32 2.0, %v959_v44  ;;  %v961_v58 = vadd.f32 %v960_v46, %v2502_v42  ;;  %v964_v60 = vpop.f32.mrf.mxu0  ;;  %v1157_v61 = vpop.f32.mrf.mxu1 }
 0x158   : > { %1695 = vst [vmem:[%s2524_s8 + $0x1f8] sm:$0xff] %v1567_v41  ;;  %v1296_v57 = vmul.f32 2.0, %v1152_v45  ;;  %v1154_v59 = vadd.f32 %v1153_v48, %v2504_v43  ;;  %1696 = vst [vmem:[%s2524_s8 + $0x200] sm:$0xff] %v1568_v50  ;;  %v1569_v62 = vmul.f32 %v1441_v54, %v957_v26  ;;  %v965_v0 = vadd.f32 %v964_v60, %v2495_v39 }
 0x159   : > { %1698 = vst [vmem:[%s2524_s8 + $0x210] sm:$0xff] %v1570_v52  ;;  %v1571_v63 = vmul.f32 %v1443_v55, %v1150_v27  ;;  %v1158_v1 = vadd.f32 %v1157_v61, %v2497_v40  ;;  %v1444_v2 = vadd.f32 %v2507_v47, %v1294_v56  ;;  %v1295_v4 = vmul.f32 2.0, %v961_v58  ;;  %v966_v6 = vpop.f32.mrf.mxu0  ;;  %v1159_v7 = vpop.f32.mrf.mxu1 }
 0x15a   : > { %v1446_v3 = vadd.f32 %v2510_v49, %v1296_v57  ;;  %v1297_v5 = vmul.f32 2.0, %v1154_v59  ;;  %1697 = vst [vmem:[%s2524_s8 + $0x208] sm:$0xff] %v1569_v62  ;;  %v1298_v8 = vmul.f32 2.0, %v965_v0  ;;  %v967_v10 = vadd.f32 %v966_v6, %v2502_v42 }
 0x15b   : > { %1699 = vst [vmem:[%s2524_s8 + $0x218] sm:$0xff] %v1571_v63  ;;  %v1300_v9 = vmul.f32 2.0, %v1158_v1  ;;  %v1160_v11 = vadd.f32 %v1159_v7, %v2504_v43  ;;  %v1572_v12 = vmul.f32 %v1444_v2, %v959_v44  ;;  %v1445_v14 = vadd.f32 %v2512_v51, %v1295_v4  ;;  %v968_v16 = vpop.f32.mrf.mxu0  ;;  %v1161_v17 = vpop.f32.mrf.mxu1 }
 0x15c   : > { %v1574_v13 = vmul.f32 %v1446_v3, %v1152_v45  ;;  %v1447_v15 = vadd.f32 %v2514_v53, %v1297_v5  ;;  %v1448_v18 = vadd.f32 %v2507_v47, %v1298_v8  ;;  %v1299_v20 = vmul.f32 2.0, %v967_v10 }
 0x15d   : > { %v1450_v19 = vadd.f32 %v2510_v49, %v1300_v9  ;;  %v1301_v21 = vmul.f32 2.0, %v1160_v11  ;;  %1700 = vst [vmem:[%s2524_s8 + $0x220] sm:$0xff] %v1572_v12  ;;  %v1573_v22 = vmul.f32 %v1445_v14, %v961_v58  ;;  %v969_v24 = vadd.f32 %v968_v16, %v2495_v39  ;;  %v970_v26 = vpop.f32.mrf.mxu0  ;;  %v1163_v27 = vpop.f32.mrf.mxu1 }
 0x15e   : > { %1702 = vst [vmem:[%s2524_s8 + $0x230] sm:$0xff] %v1574_v13  ;;  %v1575_v23 = vmul.f32 %v1447_v15, %v1154_v59  ;;  %v1162_v25 = vadd.f32 %v1161_v17, %v2497_v40  ;;  %v1576_v28 = vmul.f32 %v1448_v18, %v965_v0  ;;  %v1449_v30 = vadd.f32 %v2512_v51, %v1299_v20 }
 0x15f   : > { %v1578_v29 = vmul.f32 %v1450_v19, %v1158_v1  ;;  %v1451_v31 = vadd.f32 %v2514_v53, %v1301_v21  ;;  %1701 = vst [vmem:[%s2524_s8 + $0x228] sm:$0xff] %v1573_v22  ;;  %v1302_v32 = vmul.f32 2.0, %v969_v24  ;;  %v971_v34 = vadd.f32 %v970_v26, %v2502_v42  ;;  %v974_v36 = vpop.f32.mrf.mxu0  ;;  %v1167_v37 = vpop.f32.mrf.mxu1 }
 0x160   : > { %1703 = vst [vmem:[%s2524_s8 + $0x238] sm:$0xff] %v1575_v23  ;;  %v1304_v33 = vmul.f32 2.0, %v1162_v25  ;;  %v1164_v35 = vadd.f32 %v1163_v27, %v2504_v43  ;;  %1704 = vst [vmem:[%s2524_s8 + $0x240] sm:$0xff] %v1576_v28  ;;  %v1577_v38 = vmul.f32 %v1449_v30, %v967_v10  ;;  %v975_v44 = vadd.f32 %v974_v36, %v2495_v39 }
 0x161   : > { %1706 = vst [vmem:[%s2524_s8 + $0x250] sm:$0xff] %v1578_v29  ;;  %v1579_v41 = vmul.f32 %v1451_v31, %v1160_v11  ;;  %v1168_v45 = vadd.f32 %v1167_v37, %v2497_v40  ;;  %v1452_v46 = vadd.f32 %v2507_v47, %v1302_v32  ;;  %v1303_v50 = vmul.f32 2.0, %v971_v34  ;;  %v976_v54 = vpop.f32.mrf.mxu0  ;;  %v1169_v55 = vpop.f32.mrf.mxu1 }
 0x162   : > { %v1454_v48 = vadd.f32 %v2510_v49, %v1304_v33  ;;  %v1305_v52 = vmul.f32 2.0, %v1164_v35  ;;  %1705 = vst [vmem:[%s2524_s8 + $0x248] sm:$0xff] %v1577_v38  ;;  %v1306_v56 = vmul.f32 2.0, %v975_v44  ;;  %v977_v58 = vadd.f32 %v976_v54, %v2502_v42 }
 0x163   : > { %1707 = vst [vmem:[%s2524_s8 + $0x258] sm:$0xff] %v1579_v41  ;;  %v1308_v57 = vmul.f32 2.0, %v1168_v45  ;;  %v1170_v59 = vadd.f32 %v1169_v55, %v2504_v43  ;;  %v1580_v60 = vmul.f32 %v1452_v46, %v969_v24  ;;  %v1453_v62 = vadd.f32 %v2512_v51, %v1303_v50  ;;  %v978_v0 = vpop.f32.mrf.mxu0  ;;  %v1171_v1 = vpop.f32.mrf.mxu1 }
 0x164   : > { %v1582_v61 = vmul.f32 %v1454_v48, %v1162_v25  ;;  %v1455_v63 = vadd.f32 %v2514_v53, %v1305_v52  ;;  %v1456_v2 = vadd.f32 %v2507_v47, %v1306_v56  ;;  %v1307_v4 = vmul.f32 2.0, %v977_v58 }
 0x165   : > { %v1458_v3 = vadd.f32 %v2510_v49, %v1308_v57  ;;  %v1309_v5 = vmul.f32 2.0, %v1170_v59  ;;  %1708 = vst [vmem:[%s2524_s8 + $0x260] sm:$0xff] %v1580_v60  ;;  %v1581_v6 = vmul.f32 %v1453_v62, %v971_v34  ;;  %v979_v8 = vadd.f32 %v978_v0, %v2495_v39  ;;  %v980_v10 = vpop.f32.mrf.mxu0  ;;  %v1173_v11 = vpop.f32.mrf.mxu1 }
 0x166   : > { %1710 = vst [vmem:[%s2524_s8 + $0x270] sm:$0xff] %v1582_v61  ;;  %v1583_v7 = vmul.f32 %v1455_v63, %v1164_v35  ;;  %v1172_v9 = vadd.f32 %v1171_v1, %v2497_v40  ;;  %v1584_v12 = vmul.f32 %v1456_v2, %v975_v44  ;;  %v1457_v14 = vadd.f32 %v2512_v51, %v1307_v4 }
 0x167   : > { %v1586_v13 = vmul.f32 %v1458_v3, %v1168_v45  ;;  %v1459_v15 = vadd.f32 %v2514_v53, %v1309_v5  ;;  %1709 = vst [vmem:[%s2524_s8 + $0x268] sm:$0xff] %v1581_v6  ;;  %v1310_v16 = vmul.f32 2.0, %v979_v8  ;;  %v981_v18 = vadd.f32 %v980_v10, %v2502_v42  ;;  %v984_v20 = vpop.f32.mrf.mxu0  ;;  %v1177_v21 = vpop.f32.mrf.mxu1 }
 0x168   : > { %1711 = vst [vmem:[%s2524_s8 + $0x278] sm:$0xff] %v1583_v7  ;;  %v1312_v17 = vmul.f32 2.0, %v1172_v9  ;;  %v1174_v19 = vadd.f32 %v1173_v11, %v2504_v43  ;;  %1712 = vst [vmem:[%s2524_s8 + $0x280] sm:$0xff] %v1584_v12  ;;  %v1585_v22 = vmul.f32 %v1457_v14, %v977_v58  ;;  %v985_v24 = vadd.f32 %v984_v20, %v2495_v39 }
 0x169   : > { %1714 = vst [vmem:[%s2524_s8 + $0x290] sm:$0xff] %v1586_v13  ;;  %v1587_v23 = vmul.f32 %v1459_v15, %v1170_v59  ;;  %v1178_v25 = vadd.f32 %v1177_v21, %v2497_v40  ;;  %v1460_v26 = vadd.f32 %v2507_v47, %v1310_v16  ;;  %v1311_v28 = vmul.f32 2.0, %v981_v18  ;;  %v986_v30 = vpop.f32.mrf.mxu0  ;;  %v1179_v31 = vpop.f32.mrf.mxu1 }
 0x16a   : > { %v1462_v27 = vadd.f32 %v2510_v49, %v1312_v17  ;;  %v1313_v29 = vmul.f32 2.0, %v1174_v19  ;;  %1713 = vst [vmem:[%s2524_s8 + $0x288] sm:$0xff] %v1585_v22  ;;  %v1314_v32 = vmul.f32 2.0, %v985_v24  ;;  %v987_v34 = vadd.f32 %v986_v30, %v2502_v42 }
 0x16b   : > { %1715 = vst [vmem:[%s2524_s8 + $0x298] sm:$0xff] %v1587_v23  ;;  %v1316_v33 = vmul.f32 2.0, %v1178_v25  ;;  %v1180_v35 = vadd.f32 %v1179_v31, %v2504_v43  ;;  %v1588_v36 = vmul.f32 %v1460_v26, %v979_v8  ;;  %v1461_v38 = vadd.f32 %v2512_v51, %v1311_v28  ;;  %v988_v44 = vpop.f32.mrf.mxu0  ;;  %v1181_v45 = vpop.f32.mrf.mxu1 }
 0x16c   : > { %v1590_v37 = vmul.f32 %v1462_v27, %v1172_v9  ;;  %v1463_v41 = vadd.f32 %v2514_v53, %v1313_v29  ;;  %v1464_v46 = vadd.f32 %v2507_v47, %v1314_v32  ;;  %v1315_v50 = vmul.f32 2.0, %v987_v34 }
 0x16d   : > { %v1466_v48 = vadd.f32 %v2510_v49, %v1316_v33  ;;  %v1317_v52 = vmul.f32 2.0, %v1180_v35  ;;  %1716 = vst [vmem:[%s2524_s8 + $0x2a0] sm:$0xff] %v1588_v36  ;;  %v1589_v54 = vmul.f32 %v1461_v38, %v981_v18  ;;  %v989_v56 = vadd.f32 %v988_v44, %v2495_v39  ;;  %v990_v58 = vpop.f32.mrf.mxu0  ;;  %v1183_v59 = vpop.f32.mrf.mxu1 }
 0x16e   : > { %1718 = vst [vmem:[%s2524_s8 + $0x2b0] sm:$0xff] %v1590_v37  ;;  %v1591_v55 = vmul.f32 %v1463_v41, %v1174_v19  ;;  %v1182_v57 = vadd.f32 %v1181_v45, %v2497_v40  ;;  %v1592_v60 = vmul.f32 %v1464_v46, %v985_v24  ;;  %v1465_v62 = vadd.f32 %v2512_v51, %v1315_v50 }
 0x16f   : > { %v1594_v61 = vmul.f32 %v1466_v48, %v1178_v25  ;;  %v1467_v63 = vadd.f32 %v2514_v53, %v1317_v52  ;;  %1717 = vst [vmem:[%s2524_s8 + $0x2a8] sm:$0xff] %v1589_v54  ;;  %v1318_v0 = vmul.f32 2.0, %v989_v56  ;;  %v991_v2 = vadd.f32 %v990_v58, %v2502_v42  ;;  %v994_v4 = vpop.f32.mrf.mxu0  ;;  %v1187_v5 = vpop.f32.mrf.mxu1 }
 0x170   : > { %1719 = vst [vmem:[%s2524_s8 + $0x2b8] sm:$0xff] %v1591_v55  ;;  %v1320_v1 = vmul.f32 2.0, %v1182_v57  ;;  %v1184_v3 = vadd.f32 %v1183_v59, %v2504_v43  ;;  %1720 = vst [vmem:[%s2524_s8 + $0x2c0] sm:$0xff] %v1592_v60  ;;  %v1593_v6 = vmul.f32 %v1465_v62, %v987_v34  ;;  %v995_v8 = vadd.f32 %v994_v4, %v2495_v39 }
 0x171   : > { %1722 = vst [vmem:[%s2524_s8 + $0x2d0] sm:$0xff] %v1594_v61  ;;  %v1595_v7 = vmul.f32 %v1467_v63, %v1180_v35  ;;  %v1188_v9 = vadd.f32 %v1187_v5, %v2497_v40  ;;  %v1468_v10 = vadd.f32 %v2507_v47, %v1318_v0  ;;  %v1319_v12 = vmul.f32 2.0, %v991_v2  ;;  %v996_v14 = vpop.f32.mrf.mxu0  ;;  %v1189_v15 = vpop.f32.mrf.mxu1 }
 0x172   : > { %v1470_v11 = vadd.f32 %v2510_v49, %v1320_v1  ;;  %v1321_v13 = vmul.f32 2.0, %v1184_v3  ;;  %1721 = vst [vmem:[%s2524_s8 + $0x2c8] sm:$0xff] %v1593_v6  ;;  %v1322_v16 = vmul.f32 2.0, %v995_v8  ;;  %v997_v18 = vadd.f32 %v996_v14, %v2502_v42 }
 0x173   : > { %1723 = vst [vmem:[%s2524_s8 + $0x2d8] sm:$0xff] %v1595_v7  ;;  %v1324_v17 = vmul.f32 2.0, %v1188_v9  ;;  %v1190_v19 = vadd.f32 %v1189_v15, %v2504_v43  ;;  %v1596_v20 = vmul.f32 %v1468_v10, %v989_v56  ;;  %v1469_v22 = vadd.f32 %v2512_v51, %v1319_v12  ;;  %v998_v24 = vpop.f32.mrf.mxu0  ;;  %v1191_v25 = vpop.f32.mrf.mxu1 }
 0x174   : > { %v1598_v21 = vmul.f32 %v1470_v11, %v1182_v57  ;;  %v1471_v23 = vadd.f32 %v2514_v53, %v1321_v13  ;;  %v1472_v26 = vadd.f32 %v2507_v47, %v1322_v16  ;;  %v1323_v28 = vmul.f32 2.0, %v997_v18 }
 0x175   : > { %v1474_v27 = vadd.f32 %v2510_v49, %v1324_v17  ;;  %v1325_v29 = vmul.f32 2.0, %v1190_v19  ;;  %1724 = vst [vmem:[%s2524_s8 + $0x2e0] sm:$0xff] %v1596_v20  ;;  %v1597_v30 = vmul.f32 %v1469_v22, %v991_v2  ;;  %v999_v32 = vadd.f32 %v998_v24, %v2495_v39  ;;  %v1000_v34 = vpop.f32.mrf.mxu0  ;;  %v1193_v35 = vpop.f32.mrf.mxu1 }
 0x176   : > { %1726 = vst [vmem:[%s2524_s8 + $0x2f0] sm:$0xff] %v1598_v21  ;;  %v1599_v31 = vmul.f32 %v1471_v23, %v1184_v3  ;;  %v1192_v33 = vadd.f32 %v1191_v25, %v2497_v40  ;;  %v1600_v36 = vmul.f32 %v1472_v26, %v995_v8  ;;  %v1473_v38 = vadd.f32 %v2512_v51, %v1323_v28 }
 0x177   : > { %v1602_v37 = vmul.f32 %v1474_v27, %v1188_v9  ;;  %v1475_v41 = vadd.f32 %v2514_v53, %v1325_v29  ;;  %1725 = vst [vmem:[%s2524_s8 + $0x2e8] sm:$0xff] %v1597_v30  ;;  %v1326_v44 = vmul.f32 2.0, %v999_v32  ;;  %v1001_v46 = vadd.f32 %v1000_v34, %v2502_v42  ;;  %v1004_v50 = vpop.f32.mrf.mxu0  ;;  %v1197_v52 = vpop.f32.mrf.mxu1 }
 0x178   : > { %1727 = vst [vmem:[%s2524_s8 + $0x2f8] sm:$0xff] %v1599_v31  ;;  %v1328_v45 = vmul.f32 2.0, %v1192_v33  ;;  %v1194_v48 = vadd.f32 %v1193_v35, %v2504_v43  ;;  %1728 = vst [vmem:[%s2524_s8 + $0x300] sm:$0xff] %v1600_v36  ;;  %v1601_v54 = vmul.f32 %v1473_v38, %v997_v18  ;;  %v1005_v56 = vadd.f32 %v1004_v50, %v2495_v39 }
 0x179   : > { %1730 = vst [vmem:[%s2524_s8 + $0x310] sm:$0xff] %v1602_v37  ;;  %v1603_v55 = vmul.f32 %v1475_v41, %v1190_v19  ;;  %v1198_v57 = vadd.f32 %v1197_v52, %v2497_v40  ;;  %v1476_v58 = vadd.f32 %v2507_v47, %v1326_v44  ;;  %v1327_v60 = vmul.f32 2.0, %v1001_v46  ;;  %v1006_v62 = vpop.f32.mrf.mxu0  ;;  %v1199_v63 = vpop.f32.mrf.mxu1 }
 0x17a   : > { %v1478_v59 = vadd.f32 %v2510_v49, %v1328_v45  ;;  %v1329_v61 = vmul.f32 2.0, %v1194_v48  ;;  %1729 = vst [vmem:[%s2524_s8 + $0x308] sm:$0xff] %v1601_v54  ;;  %v1330_v0 = vmul.f32 2.0, %v1005_v56  ;;  %v1007_v2 = vadd.f32 %v1006_v62, %v2502_v42 }
 0x17b   : > { %1731 = vst [vmem:[%s2524_s8 + $0x318] sm:$0xff] %v1603_v55  ;;  %v1332_v1 = vmul.f32 2.0, %v1198_v57  ;;  %v1200_v3 = vadd.f32 %v1199_v63, %v2504_v43  ;;  %v1604_v4 = vmul.f32 %v1476_v58, %v999_v32  ;;  %v1477_v6 = vadd.f32 %v2512_v51, %v1327_v60  ;;  %v1008_v8 = vpop.f32.mrf.mxu0  ;;  %v1201_v9 = vpop.f32.mrf.mxu1 }
 0x17c   : > { %v1606_v5 = vmul.f32 %v1478_v59, %v1192_v33  ;;  %v1479_v7 = vadd.f32 %v2514_v53, %v1329_v61  ;;  %v1480_v10 = vadd.f32 %v2507_v47, %v1330_v0  ;;  %v1331_v12 = vmul.f32 2.0, %v1007_v2 }
 0x17d   : > { %v1482_v11 = vadd.f32 %v2510_v49, %v1332_v1  ;;  %v1333_v13 = vmul.f32 2.0, %v1200_v3  ;;  %1732 = vst [vmem:[%s2524_s8 + $0x320] sm:$0xff] %v1604_v4  ;;  %v1605_v14 = vmul.f32 %v1477_v6, %v1001_v46  ;;  %v1009_v16 = vadd.f32 %v1008_v8, %v2495_v39  ;;  %v1010_v18 = vpop.f32.mrf.mxu0  ;;  %v1203_v19 = vpop.f32.mrf.mxu1 }
 0x17e   : > { %1734 = vst [vmem:[%s2524_s8 + $0x330] sm:$0xff] %v1606_v5  ;;  %v1607_v15 = vmul.f32 %v1479_v7, %v1194_v48  ;;  %v1202_v17 = vadd.f32 %v1201_v9, %v2497_v40  ;;  %v1608_v20 = vmul.f32 %v1480_v10, %v1005_v56  ;;  %v1481_v22 = vadd.f32 %v2512_v51, %v1331_v12 }
 0x17f   : > { %v1610_v21 = vmul.f32 %v1482_v11, %v1198_v57  ;;  %v1483_v23 = vadd.f32 %v2514_v53, %v1333_v13  ;;  %1733 = vst [vmem:[%s2524_s8 + $0x328] sm:$0xff] %v1605_v14  ;;  %v1334_v24 = vmul.f32 2.0, %v1009_v16  ;;  %v1011_v26 = vadd.f32 %v1010_v18, %v2502_v42  ;;  %v1014_v28 = vpop.f32.mrf.mxu0  ;;  %v1207_v29 = vpop.f32.mrf.mxu1 }
 0x180   : > { %1735 = vst [vmem:[%s2524_s8 + $0x338] sm:$0xff] %v1607_v15  ;;  %v1336_v25 = vmul.f32 2.0, %v1202_v17  ;;  %v1204_v27 = vadd.f32 %v1203_v19, %v2504_v43  ;;  %1736 = vst [vmem:[%s2524_s8 + $0x340] sm:$0xff] %v1608_v20  ;;  %v1609_v30 = vmul.f32 %v1481_v22, %v1007_v2  ;;  %v1015_v32 = vadd.f32 %v1014_v28, %v2495_v39 }
 0x181   : > { %1738 = vst [vmem:[%s2524_s8 + $0x350] sm:$0xff] %v1610_v21  ;;  %v1611_v31 = vmul.f32 %v1483_v23, %v1200_v3  ;;  %v1208_v33 = vadd.f32 %v1207_v29, %v2497_v40  ;;  %v1484_v34 = vadd.f32 %v2507_v47, %v1334_v24  ;;  %v1335_v36 = vmul.f32 2.0, %v1011_v26  ;;  %v1016_v38 = vpop.f32.mrf.mxu0  ;;  %v1209_v41 = vpop.f32.mrf.mxu1 }
 0x182   : > { %v1486_v35 = vadd.f32 %v2510_v49, %v1336_v25  ;;  %v1337_v37 = vmul.f32 2.0, %v1204_v27  ;;  %1737 = vst [vmem:[%s2524_s8 + $0x348] sm:$0xff] %v1609_v30  ;;  %v1338_v44 = vmul.f32 2.0, %v1015_v32  ;;  %v1017_v46 = vadd.f32 %v1016_v38, %v2502_v42 }
 0x183   : > { %1739 = vst [vmem:[%s2524_s8 + $0x358] sm:$0xff] %v1611_v31  ;;  %v1340_v45 = vmul.f32 2.0, %v1208_v33  ;;  %v1210_v48 = vadd.f32 %v1209_v41, %v2504_v43  ;;  %v1612_v50 = vmul.f32 %v1484_v34, %v1009_v16  ;;  %v1485_v54 = vadd.f32 %v2512_v51, %v1335_v36  ;;  %v1018_v56 = vpop.f32.mrf.mxu0  ;;  %v1211_v57 = vpop.f32.mrf.mxu1 }
 0x184   : > { %v1614_v52 = vmul.f32 %v1486_v35, %v1202_v17  ;;  %v1487_v55 = vadd.f32 %v2514_v53, %v1337_v37  ;;  %v1488_v58 = vadd.f32 %v2507_v47, %v1338_v44  ;;  %v1339_v60 = vmul.f32 2.0, %v1017_v46 }
 0x185   : > { %v1490_v59 = vadd.f32 %v2510_v49, %v1340_v45  ;;  %v1341_v61 = vmul.f32 2.0, %v1210_v48  ;;  %1740 = vst [vmem:[%s2524_s8 + $0x360] sm:$0xff] %v1612_v50  ;;  %v1613_v62 = vmul.f32 %v1485_v54, %v1011_v26  ;;  %v1019_v0 = vadd.f32 %v1018_v56, %v2495_v39  ;;  %v1020_v2 = vpop.f32.mrf.mxu0  ;;  %v1213_v3 = vpop.f32.mrf.mxu1 }
 0x186   : > { %1742 = vst [vmem:[%s2524_s8 + $0x370] sm:$0xff] %v1614_v52  ;;  %v1615_v63 = vmul.f32 %v1487_v55, %v1204_v27  ;;  %v1212_v1 = vadd.f32 %v1211_v57, %v2497_v40  ;;  %v1616_v4 = vmul.f32 %v1488_v58, %v1015_v32  ;;  %v1489_v6 = vadd.f32 %v2512_v51, %v1339_v60 }
 0x187   : > { %v1618_v5 = vmul.f32 %v1490_v59, %v1208_v33  ;;  %v1491_v7 = vadd.f32 %v2514_v53, %v1341_v61  ;;  %1741 = vst [vmem:[%s2524_s8 + $0x368] sm:$0xff] %v1613_v62  ;;  %v1342_v8 = vmul.f32 2.0, %v1019_v0  ;;  %v1021_v10 = vadd.f32 %v1020_v2, %v2502_v42  ;;  %v1024_v12 = vpop.f32.mrf.mxu0  ;;  %v1217_v13 = vpop.f32.mrf.mxu1 }
 0x188   : > { %1743 = vst [vmem:[%s2524_s8 + $0x378] sm:$0xff] %v1615_v63  ;;  %v1344_v9 = vmul.f32 2.0, %v1212_v1  ;;  %v1214_v11 = vadd.f32 %v1213_v3, %v2504_v43  ;;  %1744 = vst [vmem:[%s2524_s8 + $0x380] sm:$0xff] %v1616_v4  ;;  %v1617_v14 = vmul.f32 %v1489_v6, %v1017_v46  ;;  %v1025_v16 = vadd.f32 %v1024_v12, %v2495_v39 }
 0x189   : > { %1746 = vst [vmem:[%s2524_s8 + $0x390] sm:$0xff] %v1618_v5  ;;  %v1619_v15 = vmul.f32 %v1491_v7, %v1210_v48  ;;  %v1218_v17 = vadd.f32 %v1217_v13, %v2497_v40  ;;  %v1492_v18 = vadd.f32 %v2507_v47, %v1342_v8  ;;  %v1343_v20 = vmul.f32 2.0, %v1021_v10  ;;  %v1026_v22 = vpop.f32.mrf.mxu0  ;;  %v1219_v23 = vpop.f32.mrf.mxu1 }
 0x18a   : > { %v1494_v19 = vadd.f32 %v2510_v49, %v1344_v9  ;;  %v1345_v21 = vmul.f32 2.0, %v1214_v11  ;;  %1745 = vst [vmem:[%s2524_s8 + $0x388] sm:$0xff] %v1617_v14  ;;  %v1346_v24 = vmul.f32 2.0, %v1025_v16  ;;  %v1027_v26 = vadd.f32 %v1026_v22, %v2502_v42 }
 0x18b   : > { %1747 = vst [vmem:[%s2524_s8 + $0x398] sm:$0xff] %v1619_v15  ;;  %v1348_v25 = vmul.f32 2.0, %v1218_v17  ;;  %v1220_v27 = vadd.f32 %v1219_v23, %v2504_v43  ;;  %v1620_v28 = vmul.f32 %v1492_v18, %v1019_v0  ;;  %v1493_v30 = vadd.f32 %v2512_v51, %v1343_v20  ;;  %v1028_v32 = vpop.f32.mrf.mxu0  ;;  %v1221_v33 = vpop.f32.mrf.mxu1 }
 0x18c   : > { %v1622_v29 = vmul.f32 %v1494_v19, %v1212_v1  ;;  %v1495_v31 = vadd.f32 %v2514_v53, %v1345_v21  ;;  %v1496_v34 = vadd.f32 %v2507_v47, %v1346_v24  ;;  %v1347_v36 = vmul.f32 2.0, %v1027_v26 }
 0x18d   : > { %v1498_v35 = vadd.f32 %v2510_v49, %v1348_v25  ;;  %v1349_v37 = vmul.f32 2.0, %v1220_v27  ;;  %1748 = vst [vmem:[%s2524_s8 + $0x3a0] sm:$0xff] %v1620_v28  ;;  %v1621_v38 = vmul.f32 %v1493_v30, %v1021_v10  ;;  %v1029_v44 = vadd.f32 %v1028_v32, %v2495_v39  ;;  %v1030_v46 = vpop.f32.mrf.mxu0  ;;  %v1223_v48 = vpop.f32.mrf.mxu1 }
 0x18e   : > { %1750 = vst [vmem:[%s2524_s8 + $0x3b0] sm:$0xff] %v1622_v29  ;;  %v1623_v41 = vmul.f32 %v1495_v31, %v1214_v11  ;;  %v1222_v45 = vadd.f32 %v1221_v33, %v2497_v40  ;;  %v1624_v50 = vmul.f32 %v1496_v34, %v1025_v16  ;;  %v1497_v54 = vadd.f32 %v2512_v51, %v1347_v36 }
 0x18f   : > { %v1626_v52 = vmul.f32 %v1498_v35, %v1218_v17  ;;  %v1499_v55 = vadd.f32 %v2514_v53, %v1349_v37  ;;  %1749 = vst [vmem:[%s2524_s8 + $0x3a8] sm:$0xff] %v1621_v38  ;;  %v1350_v56 = vmul.f32 2.0, %v1029_v44  ;;  %v1031_v58 = vadd.f32 %v1030_v46, %v2502_v42 }
 0x190   : > { %1751 = vst [vmem:[%s2524_s8 + $0x3b8] sm:$0xff] %v1623_v41  ;;  %v1352_v57 = vmul.f32 2.0, %v1222_v45  ;;  %v1224_v39 = vadd.f32 %v1223_v48, %v2504_v43  ;;  %1752 = vst [vmem:[%s2524_s8 + $0x3c0] sm:$0xff] %v1624_v50  ;;  %v1625_v40 = vmul.f32 %v1497_v54, %v1027_v26 }
 0x191   : > { %1754 = vst [vmem:[%s2524_s8 + $0x3d0] sm:$0xff] %v1626_v52  ;;  %v1627_v59 = vmul.f32 %v1499_v55, %v1220_v27  ;;  %v1500_v60 = vadd.f32 %v2507_v47, %v1350_v56  ;;  %v1351_v62 = vmul.f32 2.0, %v1031_v58 }
 0x192   : > { %v1502_v61 = vadd.f32 %v2510_v49, %v1352_v57  ;;  %v1353_v63 = vmul.f32 2.0, %v1224_v39  ;;  %1753 = vst [vmem:[%s2524_s8 + $0x3c8] sm:$0xff] %v1625_v40 }
 0x193   : > { %1755 = vst [vmem:[%s2524_s8 + $0x3d8] sm:$0xff] %v1627_v59  ;;  %v1628_v0 = vmul.f32 %v1500_v60, %v1029_v44  ;;  %v1501_v1 = vadd.f32 %v2512_v51, %v1351_v62 }
 0x194   : > { %v1630_v42 = vmul.f32 %v1502_v61, %v1222_v45  ;;  %v1503_v43 = vadd.f32 %v2514_v53, %v1353_v63 }
 0x195   : > { %1756 = vst [vmem:[%s2524_s8 + $0x3e0] sm:$0xff] %v1628_v0  ;;  %v1629_v2 = vmul.f32 %v1501_v1, %v1031_v58 }
 0x196   : > { %1758 = vst [vmem:[%s2524_s8 + $0x3f0] sm:$0xff] %v1630_v42  ;;  %v1631_v3 = vmul.f32 %v1503_v43, %v1224_v39 }
 0x197   : > { %1757 = vst [vmem:[%s2524_s8 + $0x3e8] sm:$0xff] %v1629_v2 }
 0x198   : > { %1759 = vst [vmem:[%s2524_s8 + $0x3f8] sm:$0xff] %v1631_v3 }
 0x199 PF: > { %s14_s19 = sadd.s32 1, %s2192_s19   ;;  %s2924_s15 = smov %s2184_s17 }
 0x19a   : > { %p11_p7 = scmp.ge.s32.totalorder %s14_s19, 6   ;;  %s2925_s16 = smov %s2188_s18 }
 0x19b   : > { %s2926_s17 = smov %s2929_s20  ;;  %s2927_s18 = smov %s2933_s21 }
 0x19c   :  { %13 = sbr.rel (!%p11_p7) target bundleno = 3 (0x3), region = 66 }

</bundles_post_ra>
